<compile_context>
chip_gen: v6e
topology: v6e:2x2x1
jax: 0.10.0
libtpu: 0.0.40
codegen_flags: <defaults>
</compile_context>

<pallas_src>
import functools

import jax
import jax.numpy as jnp
from jax.experimental import pallas as pl
from jax.experimental.pallas import tpu as pltpu


# -----------------------------------------------------------------------------
# Fused RRDB kernel (one grid step = one batch element), channels-major layout
# -----------------------------------------------------------------------------
def _rrdb_kernel(x_ref, w_ref, b_ref, o_ref, p_ref, *,
                 H, W, C, G, num_rdb, scale, slope):
    # x_ref : (1, C, HW)                      input tile (channels-major, HW on lanes)
    # w_ref : (num_rdb, 5, SMAX, Ktot)        packed weights (cout rows, K cols)
    # b_ref : (num_rdb, 5, SMAX, 1)           packed biases
    # o_ref : (1, C, HW)                      output tile
    # p_ref : (Ktot, HW) VMEM                 incremental im2col matrix P^T
    HW = H * W

    # Horizontal-halo lane masks (vertical halo is handled by zero-fill below).
    col = jax.lax.broadcasted_iota(jnp.int32, (1, HW), 1) % W
    mask_l = col >= 1            # tap dx = -1 valid iff x-1 >= 0
    mask_r = col < (W - 1)       # tap dx = +1 valid iff x+1 <= W-1

    def shifted(t, dy, dx):
        """Zero-padded shifted window of t (cs, HW):
        result[:, y*W+x] = t[:, (y+dy)*W+(x+dx)] if in-bounds else 0."""
        cs = t.shape[0]
        off = dy * W + dx
        if off == 0:
            s = t
        elif off > 0:
            s = jnp.concatenate(
                [t[:, off:], jnp.zeros((cs, off), t.dtype)], axis=1)
        else:
            s = jnp.concatenate(
                [jnp.zeros((cs, -off), t.dtype), t[:, :off]], axis=1)
        if dx == -1:
            s = jnp.where(mask_l, s, 0.0)
        elif dx == 1:
            s = jnp.where(mask_r, s, 0.0)
        return s

    def write_segment(t, row_base):
        """Write the 9 shifted taps of a (cs, HW) segment into P^T rows
        [row_base, row_base + 9*cs).  Lane-dense (HW-wide) stores."""
        cs = t.shape[0]
        for k in range(9):                       # static unroll over 3x3 taps
            dy, dx = k // 3 - 1, k % 3 - 1
            p_ref[row_base + k * cs: row_base + (k + 1) * cs, :] = (
                shifted(t, dy, dx))

    x0 = x_ref[0].astype(jnp.float32)            # (C, HW) RRDB input

    def rdb_body(r, out):                        # one ResidualDenseBlock
        write_segment(out, 0)                    # segment 0: the RDB input
        acc = None
        for j in range(5):                       # 5 dense-block convs (static)
            cin = C + j * G
            cout = G if j < 4 else C
            K = 9 * cin
            w = w_ref[r, j][0:cout, 0:K]                       # (cout, K)
            b = b_ref[r, j][0:cout, :]                         # (cout, 1)
            acc = jnp.dot(w, p_ref[0:K, :],
                          preferred_element_type=jnp.float32) + b   # (cout, HW)
            if j < 4:
                acc = jnp.where(acc >= 0, acc, slope * acc)    # LeakyReLU(0.2)
                write_segment(acc, 9 * C + j * 9 * G)          # append segment
        return out + scale * acc                               # RDB residual

    out = jax.lax.fori_loop(0, num_rdb, rdb_body, x0)
    o_ref[0] = (x0 + scale * out).astype(o_ref.dtype)          # RRDB residual


# -----------------------------------------------------------------------------
# Host-side weight packing, transposed: (num_rdb, 5, SMAX, Ktot)
#   K columns = [seg0 (x, C ch) | seg1 (x1, G ch) | ... ], within a segment
#   tap-major (kh*3+kw), channel-minor — matching P^T's row layout.
# -----------------------------------------------------------------------------
def _pack_rrdb_params(params, C, G):
    Ktot = 9 * (C + 4 * G)
    SMAX = max(C, G)
    w_all, b_all = [], []
    for rdb in params:
        w_stack, b_stack = [], []
        for j, (w, b) in enumerate(rdb):                 # conv j: Cin = C + j*G
            cout = w.shape[0]
            seg_sizes = [C] + [G] * j
            cols, off = [], 0
            for cs in seg_sizes:
                sub = jnp.transpose(w[:, off:off + cs], (0, 2, 3, 1))  # (cout,3,3,cs)
                cols.append(sub.reshape(cout, 9 * cs))   # col = (kh*3+kw)*cs + c
                off += cs
            wp = jnp.concatenate(cols, axis=1)           # (cout, 9*cin)
            wp = jnp.pad(wp, ((0, SMAX - cout), (0, Ktot - wp.shape[1])))
            bp = jnp.pad(b, (0, SMAX - cout)).reshape(SMAX, 1)
            w_stack.append(wp)
            b_stack.append(bp)
        w_all.append(jnp.stack(w_stack))
        b_all.append(jnp.stack(b_stack))
    # (num_rdb, 5, SMAX, Ktot), (num_rdb, 5, SMAX, 1)
    return jnp.stack(w_all), jnp.stack(b_all)


# -----------------------------------------------------------------------------
# Public wrapper: PyTorch-style NCHW in / NCHW out (free reshapes only)
# -----------------------------------------------------------------------------
def rrdb_forward_nchw(x_nchw, params, scale=0.2):
    N, C, H, W = x_nchw.shape
    G = params[0][0][0].shape[0]          # growth channels (conv1 out-channels)
    num_rdb = len(params)
    SMAX = max(C, G)
    Ktot = 9 * (C + 4 * G)
    HW = H * W

    x = x_nchw.reshape(N, C, HW)                         # channels-major, lane-dense
    w_packed, b_packed = _pack_rrdb_params(params, C, G)

    kernel = functools.partial(
        _rrdb_kernel, H=H, W=W, C=C, G=G, num_rdb=num_rdb,
        scale=scale, slope=0.2)

    out = pl.pallas_call(
        kernel,
        out_shape=jax.ShapeDtypeStruct((N, C, HW), x.dtype),
        grid_spec=pltpu.PrefetchScalarGridSpec(
            num_scalar_prefetch=0,
            grid=(N,),
            in_specs=[
                pl.BlockSpec((1, C, HW), lambda n: (n, 0, 0)),
                pl.BlockSpec((num_rdb, 5, SMAX, Ktot), lambda n: (0, 0, 0, 0)),
                pl.BlockSpec((num_rdb, 5, SMAX, 1), lambda n: (0, 0, 0, 0)),
            ],
            out_specs=pl.BlockSpec((1, C, HW), lambda n: (n, 0, 0)),
            scratch_shapes=[
                pltpu.VMEM((Ktot, HW), jnp.float32),      # im2col matrix P^T
            ],
        ),
        compiler_params=pltpu.CompilerParams(
            dimension_semantics=("parallel",),
            vmem_limit_bytes=16 * 1024 * 1024,
        ),
    )(x, w_packed, b_packed)

    return out.reshape(N, C, H, W)


# -----------------------------------------------------------------------------
# Parameter init (deterministic, PyTorch-Conv2d-like uniform init)
# -----------------------------------------------------------------------------
def _init_conv(key, c_out, c_in):
    kw, kb = jax.random.split(key)
    fan_in = c_in * 3 * 3
    bound = 1.0 / jnp.sqrt(fan_in)
    w = jax.random.uniform(kw, (c_out, c_in, 3, 3), jnp.float32, -bound, bound)
    b = jax.random.uniform(kb, (c_out,), jnp.float32, -bound, bound)
    return w, b


def init_rdb_params(key, in_channels, growth_channels):
    keys = jax.random.split(key, 5)
    params = []
    for i in range(4):
        params.append(_init_conv(keys[i], growth_channels,
                                 in_channels + i * growth_channels))
    params.append(_init_conv(keys[4], in_channels,
                             in_channels + 4 * growth_channels))
    return params


def init_rrdb_params(key, in_channels, growth_channels):
    keys = jax.random.split(key, 3)
    return [init_rdb_params(k, in_channels, growth_channels) for k in keys]


# -----------------------------------------------------------------------------
# Pure-JAX reference (for sanity check), NCHW / OIHW like PyTorch
# -----------------------------------------------------------------------------
def _ref_conv3x3(x_nchw, w_oihw, bias, lrelu):
    y = jax.lax.conv_general_dilated(
        x_nchw, w_oihw, window_strides=(1, 1), padding="SAME",
        dimension_numbers=("NCHW", "OIHW", "NCHW"))
    y = y + bias[None, :, None, None]
    if lrelu:
        y = jnp.where(y >= 0, y, 0.2 * y)
    return y


def _ref_rrdb(x_nchw, params, scale=0.2):
    out = x_nchw
    for rdb in params:
        t = out
        feats = [t]
        for j, (w, b) in enumerate(rdb):
            inp = jnp.concatenate(feats, axis=1) if len(feats) > 1 else t
            y = _ref_conv3x3(inp, w, b, lrelu=(j < 4))
            if j < 4:
                feats.append(y)
            else:
                out = t + scale * y
    return x_nchw + scale * out


# -----------------------------------------------------------------------------
if __name__ == "__main__":
    # Small shapes consistent with the module: N=2, C=4, H=W=16, growth=8.
    N, C, H, W = 2, 4, 16, 16
    GROWTH = 8

    key = jax.random.PRNGKey(0)
    kx, kp = jax.random.split(key)
    x = jax.random.normal(kx, (N, C, H, W), jnp.float32)
    params = init_rrdb_params(kp, C, GROWTH)

    fwd = jax.jit(rrdb_forward_nchw)
    out = jax.block_until_ready(fwd(x, params))
    ref = jax.block_until_ready(_ref_rrdb(x, params))

    assert out.shape == (N, C, H, W)
    err = float(jnp.max(jnp.abs(out - ref)))
    assert err < 1e-3, f"Pallas RRDB mismatch vs reference: {err}"
    print("KERNEL_OK")
</pallas_src>

<mosaic_0001>
module attributes {stable_mosaic.version = 11 : i64} {
  func.func @_rrdb_kernel(%arg0: i32, %arg1: memref<1x4x256xf32, #tpu.memory_space<vmem>>, %arg2: memref<3x5x8x324xf32, #tpu.memory_space<vmem>>, %arg3: memref<3x5x8x1xf32, #tpu.memory_space<vmem>>, %arg4: memref<1x4x256xf32, #tpu.memory_space<vmem>>, %arg5: memref<324x256xf32, #tpu.memory_space<vmem>>) attributes {dimension_semantics = [#tpu.dimension_semantics<parallel>], iteration_bounds = array<i64: 2>, scalar_prefetch = 0 : i64, scratch_operands = 1 : i64, tpu.core_type = #tpu.core_type<tc>, window_params = [{transform_indices = @transform_0, window_bounds = array<i64: 1, 4, 256>}, {pipeline_mode = #tpu.pipeline_mode<synchronous>, transform_indices = @transform_1, window_bounds = array<i64: 3, 5, 8, 324>}, {pipeline_mode = #tpu.pipeline_mode<synchronous>, transform_indices = @transform_2, window_bounds = array<i64: 3, 5, 8, 1>}, {transform_indices = @transform_3, window_bounds = array<i64: 1, 4, 256>}]} {
    %0 = tpu.iota {dimensions = array<i32: 1>} : vector<1x256xi32>
    %c16_i32 = arith.constant 16 : i32
    %c0_i32 = arith.constant 0 : i32
    %1 = arith.cmpi eq, %c16_i32, %c0_i32 : i32
    %c1_i32 = arith.constant 1 : i32
    %2 = arith.select %1, %c1_i32, %c16_i32 : i32
    %3 = vector.broadcast %2 : i32 to vector<1x256xi32>
    %4 = arith.remsi %0, %3 : vector<1x256xi32>
    %c0_i32_0 = arith.constant 0 : i32
    %5 = vector.broadcast %c0_i32_0 : i32 to vector<1x256xi32>
    %6 = arith.cmpi ne, %4, %5 : vector<1x256xi32>
    %c0_i32_1 = arith.constant 0 : i32
    %7 = vector.broadcast %c0_i32_1 : i32 to vector<1x256xi32>
    %8 = arith.cmpi slt, %4, %7 : vector<1x256xi32>
    %c0_i32_2 = arith.constant 0 : i32
    %9 = arith.cmpi slt, %2, %c0_i32_2 : i32
    %10 = vector.broadcast %9 : i1 to vector<1x256xi1>
    %11 = vector.broadcast %10 : vector<1x256xi1> to vector<1x256xi1>
    %12 = arith.xori %8, %11 : vector<1x256xi1>
    %13 = arith.andi %12, %6 : vector<1x256xi1>
    %14 = vector.broadcast %2 : i32 to vector<1x256xi32>
    %15 = arith.addi %4, %14 : vector<1x256xi32>
    %16 = arith.select %13, %15, %4 : vector<1x256xi1>, vector<1x256xi32>
    %c1_i32_3 = arith.constant 1 : i32
    %17 = vector.broadcast %c1_i32_3 : i32 to vector<1x256xi32>
    %18 = arith.cmpi sge, %16, %17 : vector<1x256xi32>
    %c15_i32 = arith.constant 15 : i32
    %19 = vector.broadcast %c15_i32 : i32 to vector<1x256xi32>
    %20 = arith.cmpi slt, %16, %19 : vector<1x256xi32>
    %c0 = arith.constant 0 : index
    %c0_4 = arith.constant 0 : index
    %c0_5 = arith.constant 0 : index
    %21 = vector.load %arg1[%c0, %c0_4, %c0_5] : memref<1x4x256xf32, #tpu.memory_space<vmem>>, vector<1x4x256xf32>
    %22 = vector.shape_cast %21 : vector<1x4x256xf32> to vector<4x256xf32>
    %c0_i32_6 = arith.constant 0 : i32
    %c3_i32 = arith.constant 3 : i32
    %23 = arith.addi %c0_i32_6, %c3_i32 : i32
    %c1_i32_7 = arith.constant 1 : i32
    %24 = scf.for %arg6 = %c0_i32_6 to %23 step %c1_i32_7 iter_args(%arg7 = %22) -> (vector<4x256xf32>)  : i32 {
      %cst_12 = arith.constant 0.000000e+00 : f32
      %31 = vector.broadcast %cst_12 : f32 to vector<4x17xf32>
      %32 = vector.extract_strided_slice %arg7 {offsets = [0, 0], sizes = [4, 239], strides = [1, 1]} : vector<4x256xf32> to vector<4x239xf32>
      %33 = tpu.concatenate %31, %32 in 1 : vector<4x17xf32>, vector<4x239xf32> -> vector<4x256xf32>
      %cst_13 = arith.constant 0.000000e+00 : f32
      %34 = vector.shape_cast %18 : vector<1x256xi1> to vector<1x256xi1>
      %35 = vector.broadcast %34 : vector<1x256xi1> to vector<4x256xi1>
      %36 = vector.broadcast %cst_13 : f32 to vector<4x256xf32>
      %37 = arith.select %35, %33, %36 : vector<4x256xi1>, vector<4x256xf32>
      %c0_14 = arith.constant 0 : index
      %c0_15 = arith.constant 0 : index
      %38 = vector.load %arg5[%c0_14, %c0_15] : memref<324x256xf32, #tpu.memory_space<vmem>>, vector<4x256xf32>
      tpu.vector_store %arg5[%c0_14, %c0_15], %37 {strides = array<i32>} : memref<324x256xf32, #tpu.memory_space<vmem>>, vector<4x256xf32>,
      %cst_16 = arith.constant 0.000000e+00 : f32
      %39 = vector.broadcast %cst_16 : f32 to vector<4x16xf32>
      %40 = vector.extract_strided_slice %arg7 {offsets = [0, 0], sizes = [4, 240], strides = [1, 1]} : vector<4x256xf32> to vector<4x240xf32>
      %41 = tpu.concatenate %39, %40 in 1 : vector<4x16xf32>, vector<4x240xf32> -> vector<4x256xf32>
      %c4 = arith.constant 4 : index
      %c0_17 = arith.constant 0 : index
      %42 = vector.load %arg5[%c4, %c0_17] : memref<324x256xf32, #tpu.memory_space<vmem>>, vector<4x256xf32>
      tpu.vector_store %arg5[%c4, %c0_17], %41 {strides = array<i32>} : memref<324x256xf32, #tpu.memory_space<vmem>>, vector<4x256xf32>,
      %cst_18 = arith.constant 0.000000e+00 : f32
      %43 = vector.broadcast %cst_18 : f32 to vector<4x15xf32>
      %44 = vector.extract_strided_slice %arg7 {offsets = [0, 0], sizes = [4, 241], strides = [1, 1]} : vector<4x256xf32> to vector<4x241xf32>
      %45 = tpu.concatenate %43, %44 in 1 : vector<4x15xf32>, vector<4x241xf32> -> vector<4x256xf32>
      %cst_19 = arith.constant 0.000000e+00 : f32
      %46 = vector.shape_cast %20 : vector<1x256xi1> to vector<1x256xi1>
      %47 = vector.broadcast %46 : vector<1x256xi1> to vector<4x256xi1>
      %48 = vector.broadcast %cst_19 : f32 to vector<4x256xf32>
      %49 = arith.select %47, %45, %48 : vector<4x256xi1>, vector<4x256xf32>
      %c8 = arith.constant 8 : index
      %c0_20 = arith.constant 0 : index
      %50 = vector.load %arg5[%c8, %c0_20] : memref<324x256xf32, #tpu.memory_space<vmem>>, vector<4x256xf32>
      tpu.vector_store %arg5[%c8, %c0_20], %49 {strides = array<i32>} : memref<324x256xf32, #tpu.memory_space<vmem>>, vector<4x256xf32>,
      %cst_21 = arith.constant 0.000000e+00 : f32
      %51 = vector.broadcast %cst_21 : f32 to vector<4x1xf32>
      %52 = vector.extract_strided_slice %arg7 {offsets = [0, 0], sizes = [4, 255], strides = [1, 1]} : vector<4x256xf32> to vector<4x255xf32>
      %53 = tpu.concatenate %51, %52 in 1 : vector<4x1xf32>, vector<4x255xf32> -> vector<4x256xf32>
      %cst_22 = arith.constant 0.000000e+00 : f32
      %54 = vector.shape_cast %18 : vector<1x256xi1> to vector<1x256xi1>
      %55 = vector.broadcast %54 : vector<1x256xi1> to vector<4x256xi1>
      %56 = vector.broadcast %cst_22 : f32 to vector<4x256xf32>
      %57 = arith.select %55, %53, %56 : vector<4x256xi1>, vector<4x256xf32>
      %c12 = arith.constant 12 : index
      %c0_23 = arith.constant 0 : index
      %58 = vector.load %arg5[%c12, %c0_23] : memref<324x256xf32, #tpu.memory_space<vmem>>, vector<4x256xf32>
      tpu.vector_store %arg5[%c12, %c0_23], %57 {strides = array<i32>} : memref<324x256xf32, #tpu.memory_space<vmem>>, vector<4x256xf32>,
      %c16 = arith.constant 16 : index
      %c0_24 = arith.constant 0 : index
      %59 = vector.load %arg5[%c16, %c0_24] : memref<324x256xf32, #tpu.memory_space<vmem>>, vector<4x256xf32>
      tpu.vector_store %arg5[%c16, %c0_24], %arg7 {strides = array<i32>} : memref<324x256xf32, #tpu.memory_space<vmem>>, vector<4x256xf32>,
      %60 = vector.extract_strided_slice %arg7 {offsets = [0, 1], sizes = [4, 255], strides = [1, 1]} : vector<4x256xf32> to vector<4x255xf32>
      %cst_25 = arith.constant 0.000000e+00 : f32
      %61 = vector.broadcast %cst_25 : f32 to vector<4x1xf32>
      %62 = tpu.concatenate %60, %61 in 1 : vector<4x255xf32>, vector<4x1xf32> -> vector<4x256xf32>
      %cst_26 = arith.constant 0.000000e+00 : f32
      %63 = vector.shape_cast %20 : vector<1x256xi1> to vector<1x256xi1>
      %64 = vector.broadcast %63 : vector<1x256xi1> to vector<4x256xi1>
      %65 = vector.broadcast %cst_26 : f32 to vector<4x256xf32>
      %66 = arith.select %64, %62, %65 : vector<4x256xi1>, vector<4x256xf32>
      %c20 = arith.constant 20 : index
      %c0_27 = arith.constant 0 : index
      %67 = vector.load %arg5[%c20, %c0_27] : memref<324x256xf32, #tpu.memory_space<vmem>>, vector<4x256xf32>
      tpu.vector_store %arg5[%c20, %c0_27], %66 {strides = array<i32>} : memref<324x256xf32, #tpu.memory_space<vmem>>, vector<4x256xf32>,
      %68 = vector.extract_strided_slice %arg7 {offsets = [0, 15], sizes = [4, 241], strides = [1, 1]} : vector<4x256xf32> to vector<4x241xf32>
      %cst_28 = arith.constant 0.000000e+00 : f32
      %69 = vector.broadcast %cst_28 : f32 to vector<4x15xf32>
      %70 = tpu.concatenate %68, %69 in 1 : vector<4x241xf32>, vector<4x15xf32> -> vector<4x256xf32>
      %cst_29 = arith.constant 0.000000e+00 : f32
      %71 = vector.shape_cast %18 : vector<1x256xi1> to vector<1x256xi1>
      %72 = vector.broadcast %71 : vector<1x256xi1> to vector<4x256xi1>
      %73 = vector.broadcast %cst_29 : f32 to vector<4x256xf32>
      %74 = arith.select %72, %70, %73 : vector<4x256xi1>, vector<4x256xf32>
      %c24 = arith.constant 24 : index
      %c0_30 = arith.constant 0 : index
      %75 = vector.load %arg5[%c24, %c0_30] : memref<324x256xf32, #tpu.memory_space<vmem>>, vector<4x256xf32>
      tpu.vector_store %arg5[%c24, %c0_30], %74 {strides = array<i32>} : memref<324x256xf32, #tpu.memory_space<vmem>>, vector<4x256xf32>,
      %76 = vector.extract_strided_slice %arg7 {offsets = [0, 16], sizes = [4, 240], strides = [1, 1]} : vector<4x256xf32> to vector<4x240xf32>
      %cst_31 = arith.constant 0.000000e+00 : f32
      %77 = vector.broadcast %cst_31 : f32 to vector<4x16xf32>
      %78 = tpu.concatenate %76, %77 in 1 : vector<4x240xf32>, vector<4x16xf32> -> vector<4x256xf32>
      %c28 = arith.constant 28 : index
      %c0_32 = arith.constant 0 : index
      %79 = vector.load %arg5[%c28, %c0_32] : memref<324x256xf32, #tpu.memory_space<vmem>>, vector<4x256xf32>
      tpu.vector_store %arg5[%c28, %c0_32], %78 {strides = array<i32>} : memref<324x256xf32, #tpu.memory_space<vmem>>, vector<4x256xf32>,
      %80 = vector.extract_strided_slice %arg7 {offsets = [0, 17], sizes = [4, 239], strides = [1, 1]} : vector<4x256xf32> to vector<4x239xf32>
      %cst_33 = arith.constant 0.000000e+00 : f32
      %81 = vector.broadcast %cst_33 : f32 to vector<4x17xf32>
      %82 = tpu.concatenate %80, %81 in 1 : vector<4x239xf32>, vector<4x17xf32> -> vector<4x256xf32>
      %cst_34 = arith.constant 0.000000e+00 : f32
      %83 = vector.shape_cast %20 : vector<1x256xi1> to vector<1x256xi1>
      %84 = vector.broadcast %83 : vector<1x256xi1> to vector<4x256xi1>
      %85 = vector.broadcast %cst_34 : f32 to vector<4x256xf32>
      %86 = arith.select %84, %82, %85 : vector<4x256xi1>, vector<4x256xf32>
      %c32 = arith.constant 32 : index
      %c0_35 = arith.constant 0 : index
      %87 = vector.load %arg5[%c32, %c0_35] : memref<324x256xf32, #tpu.memory_space<vmem>>, vector<4x256xf32>
      tpu.vector_store %arg5[%c32, %c0_35], %86 {strides = array<i32>} : memref<324x256xf32, #tpu.memory_space<vmem>>, vector<4x256xf32>,
      %88 = arith.index_cast %arg6 : i32 to index
      %c0_36 = arith.constant 0 : index
      %c0_37 = arith.constant 0 : index
      %c0_38 = arith.constant 0 : index
      %89 = vector.load %arg2[%88, %c0_36, %c0_37, %c0_38] : memref<3x5x8x324xf32, #tpu.memory_space<vmem>>, vector<1x1x8x324xf32>
      %90 = vector.shape_cast %89 : vector<1x1x8x324xf32> to vector<8x324xf32>
      %91 = vector.extract_strided_slice %90 {offsets = [0, 0], sizes = [8, 36], strides = [1, 1]} : vector<8x324xf32> to vector<8x36xf32>
      %92 = arith.index_cast %arg6 : i32 to index
      %c0_39 = arith.constant 0 : index
      %c0_40 = arith.constant 0 : index
      %c0_41 = arith.constant 0 : index
      %93 = vector.load %arg3[%92, %c0_39, %c0_40, %c0_41] : memref<3x5x8x1xf32, #tpu.memory_space<vmem>>, vector<1x1x8x1xf32>
      %94 = vector.shape_cast %93 : vector<1x1x8x1xf32> to vector<8x1xf32>
      %c0_42 = arith.constant 0 : index
      %c0_43 = arith.constant 0 : index
      %95 = vector.load %arg5[%c0_42, %c0_43] : memref<324x256xf32, #tpu.memory_space<vmem>>, vector<36x256xf32>
      %cst_44 = arith.constant dense<0.000000e+00> : vector<8x256xf32>
      %96 = tpu.matmul %91, %95, %cst_44 {dimension_numbers = #tpu.dot_dimension_numbers<[1], [0], [0], [1], [0, 0, 1, 1], [], []>} : vector<8x36xf32>, vector<36x256xf32>, vector<8x256xf32> -> vector<8x256xf32>
      %97 = vector.broadcast %94 : vector<8x1xf32> to vector<8x256xf32>
      %98 = arith.addf %96, %97 : vector<8x256xf32>
      %cst_45 = arith.constant 0.000000e+00 : f32
      %99 = vector.broadcast %cst_45 : f32 to vector<8x256xf32>
      %100 = arith.cmpf oge, %98, %99 : vector<8x256xf32>
      %cst_46 = arith.constant 2.000000e-01 : f32
      %101 = vector.broadcast %cst_46 : f32 to vector<8x256xf32>
      %102 = arith.mulf %101, %98 : vector<8x256xf32>
      %103 = arith.select %100, %98, %102 : vector<8x256xi1>, vector<8x256xf32>
      %cst_47 = arith.constant 0.000000e+00 : f32
      %104 = vector.broadcast %cst_47 : f32 to vector<8x17xf32>
      %105 = vector.extract_strided_slice %103 {offsets = [0, 0], sizes = [8, 239], strides = [1, 1]} : vector<8x256xf32> to vector<8x239xf32>
      %106 = tpu.concatenate %104, %105 in 1 : vector<8x17xf32>, vector<8x239xf32> -> vector<8x256xf32>
      %cst_48 = arith.constant 0.000000e+00 : f32
      %107 = vector.shape_cast %18 : vector<1x256xi1> to vector<1x256xi1>
      %108 = vector.broadcast %107 : vector<1x256xi1> to vector<8x256xi1>
      %109 = vector.broadcast %cst_48 : f32 to vector<8x256xf32>
      %110 = arith.select %108, %106, %109 : vector<8x256xi1>, vector<8x256xf32>
      %c36 = arith.constant 36 : index
      %c0_49 = arith.constant 0 : index
      %111 = vector.load %arg5[%c36, %c0_49] : memref<324x256xf32, #tpu.memory_space<vmem>>, vector<8x256xf32>
      tpu.vector_store %arg5[%c36, %c0_49], %110 {strides = array<i32>} : memref<324x256xf32, #tpu.memory_space<vmem>>, vector<8x256xf32>,
      %cst_50 = arith.constant 0.000000e+00 : f32
      %112 = vector.broadcast %cst_50 : f32 to vector<8x16xf32>
      %113 = vector.extract_strided_slice %103 {offsets = [0, 0], sizes = [8, 240], strides = [1, 1]} : vector<8x256xf32> to vector<8x240xf32>
      %114 = tpu.concatenate %112, %113 in 1 : vector<8x16xf32>, vector<8x240xf32> -> vector<8x256xf32>
      %c44 = arith.constant 44 : index
      %c0_51 = arith.constant 0 : index
      %115 = vector.load %arg5[%c44, %c0_51] : memref<324x256xf32, #tpu.memory_space<vmem>>, vector<8x256xf32>
      tpu.vector_store %arg5[%c44, %c0_51], %114 {strides = array<i32>} : memref<324x256xf32, #tpu.memory_space<vmem>>, vector<8x256xf32>,
      %cst_52 = arith.constant 0.000000e+00 : f32
      %116 = vector.broadcast %cst_52 : f32 to vector<8x15xf32>
      %117 = vector.extract_strided_slice %103 {offsets = [0, 0], sizes = [8, 241], strides = [1, 1]} : vector<8x256xf32> to vector<8x241xf32>
      %118 = tpu.concatenate %116, %117 in 1 : vector<8x15xf32>, vector<8x241xf32> -> vector<8x256xf32>
      %cst_53 = arith.constant 0.000000e+00 : f32
      %119 = vector.shape_cast %20 : vector<1x256xi1> to vector<1x256xi1>
      %120 = vector.broadcast %119 : vector<1x256xi1> to vector<8x256xi1>
      %121 = vector.broadcast %cst_53 : f32 to vector<8x256xf32>
      %122 = arith.select %120, %118, %121 : vector<8x256xi1>, vector<8x256xf32>
      %c52 = arith.constant 52 : index
      %c0_54 = arith.constant 0 : index
      %123 = vector.load %arg5[%c52, %c0_54] : memref<324x256xf32, #tpu.memory_space<vmem>>, vector<8x256xf32>
      tpu.vector_store %arg5[%c52, %c0_54], %122 {strides = array<i32>} : memref<324x256xf32, #tpu.memory_space<vmem>>, vector<8x256xf32>,
      %cst_55 = arith.constant 0.000000e+00 : f32
      %124 = vector.broadcast %cst_55 : f32 to vector<8x1xf32>
      %125 = vector.extract_strided_slice %103 {offsets = [0, 0], sizes = [8, 255], strides = [1, 1]} : vector<8x256xf32> to vector<8x255xf32>
      %126 = tpu.concatenate %124, %125 in 1 : vector<8x1xf32>, vector<8x255xf32> -> vector<8x256xf32>
      %cst_56 = arith.constant 0.000000e+00 : f32
      %127 = vector.shape_cast %18 : vector<1x256xi1> to vector<1x256xi1>
      %128 = vector.broadcast %127 : vector<1x256xi1> to vector<8x256xi1>
      %129 = vector.broadcast %cst_56 : f32 to vector<8x256xf32>
      %130 = arith.select %128, %126, %129 : vector<8x256xi1>, vector<8x256xf32>
      %c60 = arith.constant 60 : index
      %c0_57 = arith.constant 0 : index
      %131 = vector.load %arg5[%c60, %c0_57] : memref<324x256xf32, #tpu.memory_space<vmem>>, vector<8x256xf32>
      tpu.vector_store %arg5[%c60, %c0_57], %130 {strides = array<i32>} : memref<324x256xf32, #tpu.memory_space<vmem>>, vector<8x256xf32>,
      %c68 = arith.constant 68 : index
      %c0_58 = arith.constant 0 : index
      %132 = vector.load %arg5[%c68, %c0_58] : memref<324x256xf32, #tpu.memory_space<vmem>>, vector<8x256xf32>
      tpu.vector_store %arg5[%c68, %c0_58], %103 {strides = array<i32>} : memref<324x256xf32, #tpu.memory_space<vmem>>, vector<8x256xf32>,
      %133 = vector.extract_strided_slice %103 {offsets = [0, 1], sizes = [8, 255], strides = [1, 1]} : vector<8x256xf32> to vector<8x255xf32>
      %cst_59 = arith.constant 0.000000e+00 : f32
      %134 = vector.broadcast %cst_59 : f32 to vector<8x1xf32>
      %135 = tpu.concatenate %133, %134 in 1 : vector<8x255xf32>, vector<8x1xf32> -> vector<8x256xf32>
      %cst_60 = arith.constant 0.000000e+00 : f32
      %136 = vector.shape_cast %20 : vector<1x256xi1> to vector<1x256xi1>
      %137 = vector.broadcast %136 : vector<1x256xi1> to vector<8x256xi1>
      %138 = vector.broadcast %cst_60 : f32 to vector<8x256xf32>
      %139 = arith.select %137, %135, %138 : vector<8x256xi1>, vector<8x256xf32>
      %c76 = arith.constant 76 : index
      %c0_61 = arith.constant 0 : index
      %140 = vector.load %arg5[%c76, %c0_61] : memref<324x256xf32, #tpu.memory_space<vmem>>, vector<8x256xf32>
      tpu.vector_store %arg5[%c76, %c0_61], %139 {strides = array<i32>} : memref<324x256xf32, #tpu.memory_space<vmem>>, vector<8x256xf32>,
      %141 = vector.extract_strided_slice %103 {offsets = [0, 15], sizes = [8, 241], strides = [1, 1]} : vector<8x256xf32> to vector<8x241xf32>
      %cst_62 = arith.constant 0.000000e+00 : f32
      %142 = vector.broadcast %cst_62 : f32 to vector<8x15xf32>
      %143 = tpu.concatenate %141, %142 in 1 : vector<8x241xf32>, vector<8x15xf32> -> vector<8x256xf32>
      %cst_63 = arith.constant 0.000000e+00 : f32
      %144 = vector.shape_cast %18 : vector<1x256xi1> to vector<1x256xi1>
      %145 = vector.broadcast %144 : vector<1x256xi1> to vector<8x256xi1>
      %146 = vector.broadcast %cst_63 : f32 to vector<8x256xf32>
      %147 = arith.select %145, %143, %146 : vector<8x256xi1>, vector<8x256xf32>
      %c84 = arith.constant 84 : index
      %c0_64 = arith.constant 0 : index
      %148 = vector.load %arg5[%c84, %c0_64] : memref<324x256xf32, #tpu.memory_space<vmem>>, vector<8x256xf32>
      tpu.vector_store %arg5[%c84, %c0_64], %147 {strides = array<i32>} : memref<324x256xf32, #tpu.memory_space<vmem>>, vector<8x256xf32>,
      %149 = vector.extract_strided_slice %103 {offsets = [0, 16], sizes = [8, 240], strides = [1, 1]} : vector<8x256xf32> to vector<8x240xf32>
      %cst_65 = arith.constant 0.000000e+00 : f32
      %150 = vector.broadcast %cst_65 : f32 to vector<8x16xf32>
      %151 = tpu.concatenate %149, %150 in 1 : vector<8x240xf32>, vector<8x16xf32> -> vector<8x256xf32>
      %c92 = arith.constant 92 : index
      %c0_66 = arith.constant 0 : index
      %152 = vector.load %arg5[%c92, %c0_66] : memref<324x256xf32, #tpu.memory_space<vmem>>, vector<8x256xf32>
      tpu.vector_store %arg5[%c92, %c0_66], %151 {strides = array<i32>} : memref<324x256xf32, #tpu.memory_space<vmem>>, vector<8x256xf32>,
      %153 = vector.extract_strided_slice %103 {offsets = [0, 17], sizes = [8, 239], strides = [1, 1]} : vector<8x256xf32> to vector<8x239xf32>
      %cst_67 = arith.constant 0.000000e+00 : f32
      %154 = vector.broadcast %cst_67 : f32 to vector<8x17xf32>
      %155 = tpu.concatenate %153, %154 in 1 : vector<8x239xf32>, vector<8x17xf32> -> vector<8x256xf32>
      %cst_68 = arith.constant 0.000000e+00 : f32
      %156 = vector.shape_cast %20 : vector<1x256xi1> to vector<1x256xi1>
      %157 = vector.broadcast %156 : vector<1x256xi1> to vector<8x256xi1>
      %158 = vector.broadcast %cst_68 : f32 to vector<8x256xf32>
      %159 = arith.select %157, %155, %158 : vector<8x256xi1>, vector<8x256xf32>
      %c100 = arith.constant 100 : index
      %c0_69 = arith.constant 0 : index
      %160 = vector.load %arg5[%c100, %c0_69] : memref<324x256xf32, #tpu.memory_space<vmem>>, vector<8x256xf32>
      tpu.vector_store %arg5[%c100, %c0_69], %159 {strides = array<i32>} : memref<324x256xf32, #tpu.memory_space<vmem>>, vector<8x256xf32>,
      %161 = arith.index_cast %arg6 : i32 to index
      %c1 = arith.constant 1 : index
      %c0_70 = arith.constant 0 : index
      %c0_71 = arith.constant 0 : index
      %162 = vector.load %arg2[%161, %c1, %c0_70, %c0_71] : memref<3x5x8x324xf32, #tpu.memory_space<vmem>>, vector<1x1x8x324xf32>
      %163 = vector.shape_cast %162 : vector<1x1x8x324xf32> to vector<8x324xf32>
      %164 = vector.extract_strided_slice %163 {offsets = [0, 0], sizes = [8, 108], strides = [1, 1]} : vector<8x324xf32> to vector<8x108xf32>
      %165 = arith.index_cast %arg6 : i32 to index
      %c1_72 = arith.constant 1 : index
      %c0_73 = arith.constant 0 : index
      %c0_74 = arith.constant 0 : index
      %166 = vector.load %arg3[%165, %c1_72, %c0_73, %c0_74] : memref<3x5x8x1xf32, #tpu.memory_space<vmem>>, vector<1x1x8x1xf32>
      %167 = vector.shape_cast %166 : vector<1x1x8x1xf32> to vector<8x1xf32>
      %c0_75 = arith.constant 0 : index
      %c0_76 = arith.constant 0 : index
      %168 = vector.load %arg5[%c0_75, %c0_76] : memref<324x256xf32, #tpu.memory_space<vmem>>, vector<108x256xf32>
      %cst_77 = arith.constant dense<0.000000e+00> : vector<8x256xf32>
      %169 = tpu.matmul %164, %168, %cst_77 {dimension_numbers = #tpu.dot_dimension_numbers<[1], [0], [0], [1], [0, 0, 1, 1], [], []>} : vector<8x108xf32>, vector<108x256xf32>, vector<8x256xf32> -> vector<8x256xf32>
      %170 = vector.broadcast %167 : vector<8x1xf32> to vector<8x256xf32>
      %171 = arith.addf %169, %170 : vector<8x256xf32>
      %cst_78 = arith.constant 0.000000e+00 : f32
      %172 = vector.broadcast %cst_78 : f32 to vector<8x256xf32>
      %173 = arith.cmpf oge, %171, %172 : vector<8x256xf32>
      %cst_79 = arith.constant 2.000000e-01 : f32
      %174 = vector.broadcast %cst_79 : f32 to vector<8x256xf32>
      %175 = arith.mulf %174, %171 : vector<8x256xf32>
      %176 = arith.select %173, %171, %175 : vector<8x256xi1>, vector<8x256xf32>
      %cst_80 = arith.constant 0.000000e+00 : f32
      %177 = vector.broadcast %cst_80 : f32 to vector<8x17xf32>
      %178 = vector.extract_strided_slice %176 {offsets = [0, 0], sizes = [8, 239], strides = [1, 1]} : vector<8x256xf32> to vector<8x239xf32>
      %179 = tpu.concatenate %177, %178 in 1 : vector<8x17xf32>, vector<8x239xf32> -> vector<8x256xf32>
      %cst_81 = arith.constant 0.000000e+00 : f32
      %180 = vector.shape_cast %18 : vector<1x256xi1> to vector<1x256xi1>
      %181 = vector.broadcast %180 : vector<1x256xi1> to vector<8x256xi1>
      %182 = vector.broadcast %cst_81 : f32 to vector<8x256xf32>
      %183 = arith.select %181, %179, %182 : vector<8x256xi1>, vector<8x256xf32>
      %c108 = arith.constant 108 : index
      %c0_82 = arith.constant 0 : index
      %184 = vector.load %arg5[%c108, %c0_82] : memref<324x256xf32, #tpu.memory_space<vmem>>, vector<8x256xf32>
      tpu.vector_store %arg5[%c108, %c0_82], %183 {strides = array<i32>} : memref<324x256xf32, #tpu.memory_space<vmem>>, vector<8x256xf32>,
      %cst_83 = arith.constant 0.000000e+00 : f32
      %185 = vector.broadcast %cst_83 : f32 to vector<8x16xf32>
      %186 = vector.extract_strided_slice %176 {offsets = [0, 0], sizes = [8, 240], strides = [1, 1]} : vector<8x256xf32> to vector<8x240xf32>
      %187 = tpu.concatenate %185, %186 in 1 : vector<8x16xf32>, vector<8x240xf32> -> vector<8x256xf32>
      %c116 = arith.constant 116 : index
      %c0_84 = arith.constant 0 : index
      %188 = vector.load %arg5[%c116, %c0_84] : memref<324x256xf32, #tpu.memory_space<vmem>>, vector<8x256xf32>
      tpu.vector_store %arg5[%c116, %c0_84], %187 {strides = array<i32>} : memref<324x256xf32, #tpu.memory_space<vmem>>, vector<8x256xf32>,
      %cst_85 = arith.constant 0.000000e+00 : f32
      %189 = vector.broadcast %cst_85 : f32 to vector<8x15xf32>
      %190 = vector.extract_strided_slice %176 {offsets = [0, 0], sizes = [8, 241], strides = [1, 1]} : vector<8x256xf32> to vector<8x241xf32>
      %191 = tpu.concatenate %189, %190 in 1 : vector<8x15xf32>, vector<8x241xf32> -> vector<8x256xf32>
      %cst_86 = arith.constant 0.000000e+00 : f32
      %192 = vector.shape_cast %20 : vector<1x256xi1> to vector<1x256xi1>
      %193 = vector.broadcast %192 : vector<1x256xi1> to vector<8x256xi1>
      %194 = vector.broadcast %cst_86 : f32 to vector<8x256xf32>
      %195 = arith.select %193, %191, %194 : vector<8x256xi1>, vector<8x256xf32>
      %c124 = arith.constant 124 : index
      %c0_87 = arith.constant 0 : index
      %196 = vector.load %arg5[%c124, %c0_87] : memref<324x256xf32, #tpu.memory_space<vmem>>, vector<8x256xf32>
      tpu.vector_store %arg5[%c124, %c0_87], %195 {strides = array<i32>} : memref<324x256xf32, #tpu.memory_space<vmem>>, vector<8x256xf32>,
      %cst_88 = arith.constant 0.000000e+00 : f32
      %197 = vector.broadcast %cst_88 : f32 to vector<8x1xf32>
      %198 = vector.extract_strided_slice %176 {offsets = [0, 0], sizes = [8, 255], strides = [1, 1]} : vector<8x256xf32> to vector<8x255xf32>
      %199 = tpu.concatenate %197, %198 in 1 : vector<8x1xf32>, vector<8x255xf32> -> vector<8x256xf32>
      %cst_89 = arith.constant 0.000000e+00 : f32
      %200 = vector.shape_cast %18 : vector<1x256xi1> to vector<1x256xi1>
      %201 = vector.broadcast %200 : vector<1x256xi1> to vector<8x256xi1>
      %202 = vector.broadcast %cst_89 : f32 to vector<8x256xf32>
      %203 = arith.select %201, %199, %202 : vector<8x256xi1>, vector<8x256xf32>
      %c132 = arith.constant 132 : index
      %c0_90 = arith.constant 0 : index
      %204 = vector.load %arg5[%c132, %c0_90] : memref<324x256xf32, #tpu.memory_space<vmem>>, vector<8x256xf32>
      tpu.vector_store %arg5[%c132, %c0_90], %203 {strides = array<i32>} : memref<324x256xf32, #tpu.memory_space<vmem>>, vector<8x256xf32>,
      %c140 = arith.constant 140 : index
      %c0_91 = arith.constant 0 : index
      %205 = vector.load %arg5[%c140, %c0_91] : memref<324x256xf32, #tpu.memory_space<vmem>>, vector<8x256xf32>
      tpu.vector_store %arg5[%c140, %c0_91], %176 {strides = array<i32>} : memref<324x256xf32, #tpu.memory_space<vmem>>, vector<8x256xf32>,
      %206 = vector.extract_strided_slice %176 {offsets = [0, 1], sizes = [8, 255], strides = [1, 1]} : vector<8x256xf32> to vector<8x255xf32>
      %cst_92 = arith.constant 0.000000e+00 : f32
      %207 = vector.broadcast %cst_92 : f32 to vector<8x1xf32>
      %208 = tpu.concatenate %206, %207 in 1 : vector<8x255xf32>, vector<8x1xf32> -> vector<8x256xf32>
      %cst_93 = arith.constant 0.000000e+00 : f32
      %209 = vector.shape_cast %20 : vector<1x256xi1> to vector<1x256xi1>
      %210 = vector.broadcast %209 : vector<1x256xi1> to vector<8x256xi1>
      %211 = vector.broadcast %cst_93 : f32 to vector<8x256xf32>
      %212 = arith.select %210, %208, %211 : vector<8x256xi1>, vector<8x256xf32>
      %c148 = arith.constant 148 : index
      %c0_94 = arith.constant 0 : index
      %213 = vector.load %arg5[%c148, %c0_94] : memref<324x256xf32, #tpu.memory_space<vmem>>, vector<8x256xf32>
      tpu.vector_store %arg5[%c148, %c0_94], %212 {strides = array<i32>} : memref<324x256xf32, #tpu.memory_space<vmem>>, vector<8x256xf32>,
      %214 = vector.extract_strided_slice %176 {offsets = [0, 15], sizes = [8, 241], strides = [1, 1]} : vector<8x256xf32> to vector<8x241xf32>
      %cst_95 = arith.constant 0.000000e+00 : f32
      %215 = vector.broadcast %cst_95 : f32 to vector<8x15xf32>
      %216 = tpu.concatenate %214, %215 in 1 : vector<8x241xf32>, vector<8x15xf32> -> vector<8x256xf32>
      %cst_96 = arith.constant 0.000000e+00 : f32
      %217 = vector.shape_cast %18 : vector<1x256xi1> to vector<1x256xi1>
      %218 = vector.broadcast %217 : vector<1x256xi1> to vector<8x256xi1>
      %219 = vector.broadcast %cst_96 : f32 to vector<8x256xf32>
      %220 = arith.select %218, %216, %219 : vector<8x256xi1>, vector<8x256xf32>
      %c156 = arith.constant 156 : index
      %c0_97 = arith.constant 0 : index
      %221 = vector.load %arg5[%c156, %c0_97] : memref<324x256xf32, #tpu.memory_space<vmem>>, vector<8x256xf32>
      tpu.vector_store %arg5[%c156, %c0_97], %220 {strides = array<i32>} : memref<324x256xf32, #tpu.memory_space<vmem>>, vector<8x256xf32>,
      %222 = vector.extract_strided_slice %176 {offsets = [0, 16], sizes = [8, 240], strides = [1, 1]} : vector<8x256xf32> to vector<8x240xf32>
      %cst_98 = arith.constant 0.000000e+00 : f32
      %223 = vector.broadcast %cst_98 : f32 to vector<8x16xf32>
      %224 = tpu.concatenate %222, %223 in 1 : vector<8x240xf32>, vector<8x16xf32> -> vector<8x256xf32>
      %c164 = arith.constant 164 : index
      %c0_99 = arith.constant 0 : index
      %225 = vector.load %arg5[%c164, %c0_99] : memref<324x256xf32, #tpu.memory_space<vmem>>, vector<8x256xf32>
      tpu.vector_store %arg5[%c164, %c0_99], %224 {strides = array<i32>} : memref<324x256xf32, #tpu.memory_space<vmem>>, vector<8x256xf32>,
      %226 = vector.extract_strided_slice %176 {offsets = [0, 17], sizes = [8, 239], strides = [1, 1]} : vector<8x256xf32> to vector<8x239xf32>
      %cst_100 = arith.constant 0.000000e+00 : f32
      %227 = vector.broadcast %cst_100 : f32 to vector<8x17xf32>
      %228 = tpu.concatenate %226, %227 in 1 : vector<8x239xf32>, vector<8x17xf32> -> vector<8x256xf32>
      %cst_101 = arith.constant 0.000000e+00 : f32
      %229 = vector.shape_cast %20 : vector<1x256xi1> to vector<1x256xi1>
      %230 = vector.broadcast %229 : vector<1x256xi1> to vector<8x256xi1>
      %231 = vector.broadcast %cst_101 : f32 to vector<8x256xf32>
      %232 = arith.select %230, %228, %231 : vector<8x256xi1>, vector<8x256xf32>
      %c172 = arith.constant 172 : index
      %c0_102 = arith.constant 0 : index
      %233 = vector.load %arg5[%c172, %c0_102] : memref<324x256xf32, #tpu.memory_space<vmem>>, vector<8x256xf32>
      tpu.vector_store %arg5[%c172, %c0_102], %232 {strides = array<i32>} : memref<324x256xf32, #tpu.memory_space<vmem>>, vector<8x256xf32>,
      %234 = arith.index_cast %arg6 : i32 to index
      %c2 = arith.constant 2 : index
      %c0_103 = arith.constant 0 : index
      %c0_104 = arith.constant 0 : index
      %235 = vector.load %arg2[%234, %c2, %c0_103, %c0_104] : memref<3x5x8x324xf32, #tpu.memory_space<vmem>>, vector<1x1x8x324xf32>
      %236 = vector.shape_cast %235 : vector<1x1x8x324xf32> to vector<8x324xf32>
      %237 = vector.extract_strided_slice %236 {offsets = [0, 0], sizes = [8, 180], strides = [1, 1]} : vector<8x324xf32> to vector<8x180xf32>
      %238 = arith.index_cast %arg6 : i32 to index
      %c2_105 = arith.constant 2 : index
      %c0_106 = arith.constant 0 : index
      %c0_107 = arith.constant 0 : index
      %239 = vector.load %arg3[%238, %c2_105, %c0_106, %c0_107] : memref<3x5x8x1xf32, #tpu.memory_space<vmem>>, vector<1x1x8x1xf32>
      %240 = vector.shape_cast %239 : vector<1x1x8x1xf32> to vector<8x1xf32>
      %c0_108 = arith.constant 0 : index
      %c0_109 = arith.constant 0 : index
      %241 = vector.load %arg5[%c0_108, %c0_109] : memref<324x256xf32, #tpu.memory_space<vmem>>, vector<180x256xf32>
      %cst_110 = arith.constant dense<0.000000e+00> : vector<8x256xf32>
      %242 = tpu.matmul %237, %241, %cst_110 {dimension_numbers = #tpu.dot_dimension_numbers<[1], [0], [0], [1], [0, 0, 1, 1], [], []>} : vector<8x180xf32>, vector<180x256xf32>, vector<8x256xf32> -> vector<8x256xf32>
      %243 = vector.broadcast %240 : vector<8x1xf32> to vector<8x256xf32>
      %244 = arith.addf %242, %243 : vector<8x256xf32>
      %cst_111 = arith.constant 0.000000e+00 : f32
      %245 = vector.broadcast %cst_111 : f32 to vector<8x256xf32>
      %246 = arith.cmpf oge, %244, %245 : vector<8x256xf32>
      %cst_112 = arith.constant 2.000000e-01 : f32
      %247 = vector.broadcast %cst_112 : f32 to vector<8x256xf32>
      %248 = arith.mulf %247, %244 : vector<8x256xf32>
      %249 = arith.select %246, %244, %248 : vector<8x256xi1>, vector<8x256xf32>
      %cst_113 = arith.constant 0.000000e+00 : f32
      %250 = vector.broadcast %cst_113 : f32 to vector<8x17xf32>
      %251 = vector.extract_strided_slice %249 {offsets = [0, 0], sizes = [8, 239], strides = [1, 1]} : vector<8x256xf32> to vector<8x239xf32>
      %252 = tpu.concatenate %250, %251 in 1 : vector<8x17xf32>, vector<8x239xf32> -> vector<8x256xf32>
      %cst_114 = arith.constant 0.000000e+00 : f32
      %253 = vector.shape_cast %18 : vector<1x256xi1> to vector<1x256xi1>
      %254 = vector.broadcast %253 : vector<1x256xi1> to vector<8x256xi1>
      %255 = vector.broadcast %cst_114 : f32 to vector<8x256xf32>
      %256 = arith.select %254, %252, %255 : vector<8x256xi1>, vector<8x256xf32>
      %c180 = arith.constant 180 : index
      %c0_115 = arith.constant 0 : index
      %257 = vector.load %arg5[%c180, %c0_115] : memref<324x256xf32, #tpu.memory_space<vmem>>, vector<8x256xf32>
      tpu.vector_store %arg5[%c180, %c0_115], %256 {strides = array<i32>} : memref<324x256xf32, #tpu.memory_space<vmem>>, vector<8x256xf32>,
      %cst_116 = arith.constant 0.000000e+00 : f32
      %258 = vector.broadcast %cst_116 : f32 to vector<8x16xf32>
      %259 = vector.extract_strided_slice %249 {offsets = [0, 0], sizes = [8, 240], strides = [1, 1]} : vector<8x256xf32> to vector<8x240xf32>
      %260 = tpu.concatenate %258, %259 in 1 : vector<8x16xf32>, vector<8x240xf32> -> vector<8x256xf32>
      %c188 = arith.constant 188 : index
      %c0_117 = arith.constant 0 : index
      %261 = vector.load %arg5[%c188, %c0_117] : memref<324x256xf32, #tpu.memory_space<vmem>>, vector<8x256xf32>
      tpu.vector_store %arg5[%c188, %c0_117], %260 {strides = array<i32>} : memref<324x256xf32, #tpu.memory_space<vmem>>, vector<8x256xf32>,
      %cst_118 = arith.constant 0.000000e+00 : f32
      %262 = vector.broadcast %cst_118 : f32 to vector<8x15xf32>
      %263 = vector.extract_strided_slice %249 {offsets = [0, 0], sizes = [8, 241], strides = [1, 1]} : vector<8x256xf32> to vector<8x241xf32>
      %264 = tpu.concatenate %262, %263 in 1 : vector<8x15xf32>, vector<8x241xf32> -> vector<8x256xf32>
      %cst_119 = arith.constant 0.000000e+00 : f32
      %265 = vector.shape_cast %20 : vector<1x256xi1> to vector<1x256xi1>
      %266 = vector.broadcast %265 : vector<1x256xi1> to vector<8x256xi1>
      %267 = vector.broadcast %cst_119 : f32 to vector<8x256xf32>
      %268 = arith.select %266, %264, %267 : vector<8x256xi1>, vector<8x256xf32>
      %c196 = arith.constant 196 : index
      %c0_120 = arith.constant 0 : index
      %269 = vector.load %arg5[%c196, %c0_120] : memref<324x256xf32, #tpu.memory_space<vmem>>, vector<8x256xf32>
      tpu.vector_store %arg5[%c196, %c0_120], %268 {strides = array<i32>} : memref<324x256xf32, #tpu.memory_space<vmem>>, vector<8x256xf32>,
      %cst_121 = arith.constant 0.000000e+00 : f32
      %270 = vector.broadcast %cst_121 : f32 to vector<8x1xf32>
      %271 = vector.extract_strided_slice %249 {offsets = [0, 0], sizes = [8, 255], strides = [1, 1]} : vector<8x256xf32> to vector<8x255xf32>
      %272 = tpu.concatenate %270, %271 in 1 : vector<8x1xf32>, vector<8x255xf32> -> vector<8x256xf32>
      %cst_122 = arith.constant 0.000000e+00 : f32
      %273 = vector.shape_cast %18 : vector<1x256xi1> to vector<1x256xi1>
      %274 = vector.broadcast %273 : vector<1x256xi1> to vector<8x256xi1>
      %275 = vector.broadcast %cst_122 : f32 to vector<8x256xf32>
      %276 = arith.select %274, %272, %275 : vector<8x256xi1>, vector<8x256xf32>
      %c204 = arith.constant 204 : index
      %c0_123 = arith.constant 0 : index
      %277 = vector.load %arg5[%c204, %c0_123] : memref<324x256xf32, #tpu.memory_space<vmem>>, vector<8x256xf32>
      tpu.vector_store %arg5[%c204, %c0_123], %276 {strides = array<i32>} : memref<324x256xf32, #tpu.memory_space<vmem>>, vector<8x256xf32>,
      %c212 = arith.constant 212 : index
      %c0_124 = arith.constant 0 : index
      %278 = vector.load %arg5[%c212, %c0_124] : memref<324x256xf32, #tpu.memory_space<vmem>>, vector<8x256xf32>
      tpu.vector_store %arg5[%c212, %c0_124], %249 {strides = array<i32>} : memref<324x256xf32, #tpu.memory_space<vmem>>, vector<8x256xf32>,
      %279 = vector.extract_strided_slice %249 {offsets = [0, 1], sizes = [8, 255], strides = [1, 1]} : vector<8x256xf32> to vector<8x255xf32>
      %cst_125 = arith.constant 0.000000e+00 : f32
      %280 = vector.broadcast %cst_125 : f32 to vector<8x1xf32>
      %281 = tpu.concatenate %279, %280 in 1 : vector<8x255xf32>, vector<8x1xf32> -> vector<8x256xf32>
      %cst_126 = arith.constant 0.000000e+00 : f32
      %282 = vector.shape_cast %20 : vector<1x256xi1> to vector<1x256xi1>
      %283 = vector.broadcast %282 : vector<1x256xi1> to vector<8x256xi1>
      %284 = vector.broadcast %cst_126 : f32 to vector<8x256xf32>
      %285 = arith.select %283, %281, %284 : vector<8x256xi1>, vector<8x256xf32>
      %c220 = arith.constant 220 : index
      %c0_127 = arith.constant 0 : index
      %286 = vector.load %arg5[%c220, %c0_127] : memref<324x256xf32, #tpu.memory_space<vmem>>, vector<8x256xf32>
      tpu.vector_store %arg5[%c220, %c0_127], %285 {strides = array<i32>} : memref<324x256xf32, #tpu.memory_space<vmem>>, vector<8x256xf32>,
      %287 = vector.extract_strided_slice %249 {offsets = [0, 15], sizes = [8, 241], strides = [1, 1]} : vector<8x256xf32> to vector<8x241xf32>
      %cst_128 = arith.constant 0.000000e+00 : f32
      %288 = vector.broadcast %cst_128 : f32 to vector<8x15xf32>
      %289 = tpu.concatenate %287, %288 in 1 : vector<8x241xf32>, vector<8x15xf32> -> vector<8x256xf32>
      %cst_129 = arith.constant 0.000000e+00 : f32
      %290 = vector.shape_cast %18 : vector<1x256xi1> to vector<1x256xi1>
      %291 = vector.broadcast %290 : vector<1x256xi1> to vector<8x256xi1>
      %292 = vector.broadcast %cst_129 : f32 to vector<8x256xf32>
      %293 = arith.select %291, %289, %292 : vector<8x256xi1>, vector<8x256xf32>
      %c228 = arith.constant 228 : index
      %c0_130 = arith.constant 0 : index
      %294 = vector.load %arg5[%c228, %c0_130] : memref<324x256xf32, #tpu.memory_space<vmem>>, vector<8x256xf32>
      tpu.vector_store %arg5[%c228, %c0_130], %293 {strides = array<i32>} : memref<324x256xf32, #tpu.memory_space<vmem>>, vector<8x256xf32>,
      %295 = vector.extract_strided_slice %249 {offsets = [0, 16], sizes = [8, 240], strides = [1, 1]} : vector<8x256xf32> to vector<8x240xf32>
      %cst_131 = arith.constant 0.000000e+00 : f32
      %296 = vector.broadcast %cst_131 : f32 to vector<8x16xf32>
      %297 = tpu.concatenate %295, %296 in 1 : vector<8x240xf32>, vector<8x16xf32> -> vector<8x256xf32>
      %c236 = arith.constant 236 : index
      %c0_132 = arith.constant 0 : index
      %298 = vector.load %arg5[%c236, %c0_132] : memref<324x256xf32, #tpu.memory_space<vmem>>, vector<8x256xf32>
      tpu.vector_store %arg5[%c236, %c0_132], %297 {strides = array<i32>} : memref<324x256xf32, #tpu.memory_space<vmem>>, vector<8x256xf32>,
      %299 = vector.extract_strided_slice %249 {offsets = [0, 17], sizes = [8, 239], strides = [1, 1]} : vector<8x256xf32> to vector<8x239xf32>
      %cst_133 = arith.constant 0.000000e+00 : f32
      %300 = vector.broadcast %cst_133 : f32 to vector<8x17xf32>
      %301 = tpu.concatenate %299, %300 in 1 : vector<8x239xf32>, vector<8x17xf32> -> vector<8x256xf32>
      %cst_134 = arith.constant 0.000000e+00 : f32
      %302 = vector.shape_cast %20 : vector<1x256xi1> to vector<1x256xi1>
      %303 = vector.broadcast %302 : vector<1x256xi1> to vector<8x256xi1>
      %304 = vector.broadcast %cst_134 : f32 to vector<8x256xf32>
      %305 = arith.select %303, %301, %304 : vector<8x256xi1>, vector<8x256xf32>
      %c244 = arith.constant 244 : index
      %c0_135 = arith.constant 0 : index
      %306 = vector.load %arg5[%c244, %c0_135] : memref<324x256xf32, #tpu.memory_space<vmem>>, vector<8x256xf32>
      tpu.vector_store %arg5[%c244, %c0_135], %305 {strides = array<i32>} : memref<324x256xf32, #tpu.memory_space<vmem>>, vector<8x256xf32>,
      %307 = arith.index_cast %arg6 : i32 to index
      %c3 = arith.constant 3 : index
      %c0_136 = arith.constant 0 : index
      %c0_137 = arith.constant 0 : index
      %308 = vector.load %arg2[%307, %c3, %c0_136, %c0_137] : memref<3x5x8x324xf32, #tpu.memory_space<vmem>>, vector<1x1x8x324xf32>
      %309 = vector.shape_cast %308 : vector<1x1x8x324xf32> to vector<8x324xf32>
      %310 = vector.extract_strided_slice %309 {offsets = [0, 0], sizes = [8, 252], strides = [1, 1]} : vector<8x324xf32> to vector<8x252xf32>
      %311 = arith.index_cast %arg6 : i32 to index
      %c3_138 = arith.constant 3 : index
      %c0_139 = arith.constant 0 : index
      %c0_140 = arith.constant 0 : index
      %312 = vector.load %arg3[%311, %c3_138, %c0_139, %c0_140] : memref<3x5x8x1xf32, #tpu.memory_space<vmem>>, vector<1x1x8x1xf32>
      %313 = vector.shape_cast %312 : vector<1x1x8x1xf32> to vector<8x1xf32>
      %c0_141 = arith.constant 0 : index
      %c0_142 = arith.constant 0 : index
      %314 = vector.load %arg5[%c0_141, %c0_142] : memref<324x256xf32, #tpu.memory_space<vmem>>, vector<252x256xf32>
      %cst_143 = arith.constant dense<0.000000e+00> : vector<8x256xf32>
      %315 = tpu.matmul %310, %314, %cst_143 {dimension_numbers = #tpu.dot_dimension_numbers<[1], [0], [0], [1], [0, 0, 1, 1], [], []>} : vector<8x252xf32>, vector<252x256xf32>, vector<8x256xf32> -> vector<8x256xf32>
      %316 = vector.broadcast %313 : vector<8x1xf32> to vector<8x256xf32>
      %317 = arith.addf %315, %316 : vector<8x256xf32>
      %cst_144 = arith.constant 0.000000e+00 : f32
      %318 = vector.broadcast %cst_144 : f32 to vector<8x256xf32>
      %319 = arith.cmpf oge, %317, %318 : vector<8x256xf32>
      %cst_145 = arith.constant 2.000000e-01 : f32
      %320 = vector.broadcast %cst_145 : f32 to vector<8x256xf32>
      %321 = arith.mulf %320, %317 : vector<8x256xf32>
      %322 = arith.select %319, %317, %321 : vector<8x256xi1>, vector<8x256xf32>
      %cst_146 = arith.constant 0.000000e+00 : f32
      %323 = vector.broadcast %cst_146 : f32 to vector<8x17xf32>
      %324 = vector.extract_strided_slice %322 {offsets = [0, 0], sizes = [8, 239], strides = [1, 1]} : vector<8x256xf32> to vector<8x239xf32>
      %325 = tpu.concatenate %323, %324 in 1 : vector<8x17xf32>, vector<8x239xf32> -> vector<8x256xf32>
      %cst_147 = arith.constant 0.000000e+00 : f32
      %326 = vector.shape_cast %18 : vector<1x256xi1> to vector<1x256xi1>
      %327 = vector.broadcast %326 : vector<1x256xi1> to vector<8x256xi1>
      %328 = vector.broadcast %cst_147 : f32 to vector<8x256xf32>
      %329 = arith.select %327, %325, %328 : vector<8x256xi1>, vector<8x256xf32>
      %c252 = arith.constant 252 : index
      %c0_148 = arith.constant 0 : index
      %330 = vector.load %arg5[%c252, %c0_148] : memref<324x256xf32, #tpu.memory_space<vmem>>, vector<8x256xf32>
      tpu.vector_store %arg5[%c252, %c0_148], %329 {strides = array<i32>} : memref<324x256xf32, #tpu.memory_space<vmem>>, vector<8x256xf32>,
      %cst_149 = arith.constant 0.000000e+00 : f32
      %331 = vector.broadcast %cst_149 : f32 to vector<8x16xf32>
      %332 = vector.extract_strided_slice %322 {offsets = [0, 0], sizes = [8, 240], strides = [1, 1]} : vector<8x256xf32> to vector<8x240xf32>
      %333 = tpu.concatenate %331, %332 in 1 : vector<8x16xf32>, vector<8x240xf32> -> vector<8x256xf32>
      %c260 = arith.constant 260 : index
      %c0_150 = arith.constant 0 : index
      %334 = vector.load %arg5[%c260, %c0_150] : memref<324x256xf32, #tpu.memory_space<vmem>>, vector<8x256xf32>
      tpu.vector_store %arg5[%c260, %c0_150], %333 {strides = array<i32>} : memref<324x256xf32, #tpu.memory_space<vmem>>, vector<8x256xf32>,
      %cst_151 = arith.constant 0.000000e+00 : f32
      %335 = vector.broadcast %cst_151 : f32 to vector<8x15xf32>
      %336 = vector.extract_strided_slice %322 {offsets = [0, 0], sizes = [8, 241], strides = [1, 1]} : vector<8x256xf32> to vector<8x241xf32>
      %337 = tpu.concatenate %335, %336 in 1 : vector<8x15xf32>, vector<8x241xf32> -> vector<8x256xf32>
      %cst_152 = arith.constant 0.000000e+00 : f32
      %338 = vector.shape_cast %20 : vector<1x256xi1> to vector<1x256xi1>
      %339 = vector.broadcast %338 : vector<1x256xi1> to vector<8x256xi1>
      %340 = vector.broadcast %cst_152 : f32 to vector<8x256xf32>
      %341 = arith.select %339, %337, %340 : vector<8x256xi1>, vector<8x256xf32>
      %c268 = arith.constant 268 : index
      %c0_153 = arith.constant 0 : index
      %342 = vector.load %arg5[%c268, %c0_153] : memref<324x256xf32, #tpu.memory_space<vmem>>, vector<8x256xf32>
      tpu.vector_store %arg5[%c268, %c0_153], %341 {strides = array<i32>} : memref<324x256xf32, #tpu.memory_space<vmem>>, vector<8x256xf32>,
      %cst_154 = arith.constant 0.000000e+00 : f32
      %343 = vector.broadcast %cst_154 : f32 to vector<8x1xf32>
      %344 = vector.extract_strided_slice %322 {offsets = [0, 0], sizes = [8, 255], strides = [1, 1]} : vector<8x256xf32> to vector<8x255xf32>
      %345 = tpu.concatenate %343, %344 in 1 : vector<8x1xf32>, vector<8x255xf32> -> vector<8x256xf32>
      %cst_155 = arith.constant 0.000000e+00 : f32
      %346 = vector.shape_cast %18 : vector<1x256xi1> to vector<1x256xi1>
      %347 = vector.broadcast %346 : vector<1x256xi1> to vector<8x256xi1>
      %348 = vector.broadcast %cst_155 : f32 to vector<8x256xf32>
      %349 = arith.select %347, %345, %348 : vector<8x256xi1>, vector<8x256xf32>
      %c276 = arith.constant 276 : index
      %c0_156 = arith.constant 0 : index
      %350 = vector.load %arg5[%c276, %c0_156] : memref<324x256xf32, #tpu.memory_space<vmem>>, vector<8x256xf32>
      tpu.vector_store %arg5[%c276, %c0_156], %349 {strides = array<i32>} : memref<324x256xf32, #tpu.memory_space<vmem>>, vector<8x256xf32>,
      %c284 = arith.constant 284 : index
      %c0_157 = arith.constant 0 : index
      %351 = vector.load %arg5[%c284, %c0_157] : memref<324x256xf32, #tpu.memory_space<vmem>>, vector<8x256xf32>
      tpu.vector_store %arg5[%c284, %c0_157], %322 {strides = array<i32>} : memref<324x256xf32, #tpu.memory_space<vmem>>, vector<8x256xf32>,
      %352 = vector.extract_strided_slice %322 {offsets = [0, 1], sizes = [8, 255], strides = [1, 1]} : vector<8x256xf32> to vector<8x255xf32>
      %cst_158 = arith.constant 0.000000e+00 : f32
      %353 = vector.broadcast %cst_158 : f32 to vector<8x1xf32>
      %354 = tpu.concatenate %352, %353 in 1 : vector<8x255xf32>, vector<8x1xf32> -> vector<8x256xf32>
      %cst_159 = arith.constant 0.000000e+00 : f32
      %355 = vector.shape_cast %20 : vector<1x256xi1> to vector<1x256xi1>
      %356 = vector.broadcast %355 : vector<1x256xi1> to vector<8x256xi1>
      %357 = vector.broadcast %cst_159 : f32 to vector<8x256xf32>
      %358 = arith.select %356, %354, %357 : vector<8x256xi1>, vector<8x256xf32>
      %c292 = arith.constant 292 : index
      %c0_160 = arith.constant 0 : index
      %359 = vector.load %arg5[%c292, %c0_160] : memref<324x256xf32, #tpu.memory_space<vmem>>, vector<8x256xf32>
      tpu.vector_store %arg5[%c292, %c0_160], %358 {strides = array<i32>} : memref<324x256xf32, #tpu.memory_space<vmem>>, vector<8x256xf32>,
      %360 = vector.extract_strided_slice %322 {offsets = [0, 15], sizes = [8, 241], strides = [1, 1]} : vector<8x256xf32> to vector<8x241xf32>
      %cst_161 = arith.constant 0.000000e+00 : f32
      %361 = vector.broadcast %cst_161 : f32 to vector<8x15xf32>
      %362 = tpu.concatenate %360, %361 in 1 : vector<8x241xf32>, vector<8x15xf32> -> vector<8x256xf32>
      %cst_162 = arith.constant 0.000000e+00 : f32
      %363 = vector.shape_cast %18 : vector<1x256xi1> to vector<1x256xi1>
      %364 = vector.broadcast %363 : vector<1x256xi1> to vector<8x256xi1>
      %365 = vector.broadcast %cst_162 : f32 to vector<8x256xf32>
      %366 = arith.select %364, %362, %365 : vector<8x256xi1>, vector<8x256xf32>
      %c300 = arith.constant 300 : index
      %c0_163 = arith.constant 0 : index
      %367 = vector.load %arg5[%c300, %c0_163] : memref<324x256xf32, #tpu.memory_space<vmem>>, vector<8x256xf32>
      tpu.vector_store %arg5[%c300, %c0_163], %366 {strides = array<i32>} : memref<324x256xf32, #tpu.memory_space<vmem>>, vector<8x256xf32>,
      %368 = vector.extract_strided_slice %322 {offsets = [0, 16], sizes = [8, 240], strides = [1, 1]} : vector<8x256xf32> to vector<8x240xf32>
      %cst_164 = arith.constant 0.000000e+00 : f32
      %369 = vector.broadcast %cst_164 : f32 to vector<8x16xf32>
      %370 = tpu.concatenate %368, %369 in 1 : vector<8x240xf32>, vector<8x16xf32> -> vector<8x256xf32>
      %c308 = arith.constant 308 : index
      %c0_165 = arith.constant 0 : index
      %371 = vector.load %arg5[%c308, %c0_165] : memref<324x256xf32, #tpu.memory_space<vmem>>, vector<8x256xf32>
      tpu.vector_store %arg5[%c308, %c0_165], %370 {strides = array<i32>} : memref<324x256xf32, #tpu.memory_space<vmem>>, vector<8x256xf32>,
      %372 = vector.extract_strided_slice %322 {offsets = [0, 17], sizes = [8, 239], strides = [1, 1]} : vector<8x256xf32> to vector<8x239xf32>
      %cst_166 = arith.constant 0.000000e+00 : f32
      %373 = vector.broadcast %cst_166 : f32 to vector<8x17xf32>
      %374 = tpu.concatenate %372, %373 in 1 : vector<8x239xf32>, vector<8x17xf32> -> vector<8x256xf32>
      %cst_167 = arith.constant 0.000000e+00 : f32
      %375 = vector.shape_cast %20 : vector<1x256xi1> to vector<1x256xi1>
      %376 = vector.broadcast %375 : vector<1x256xi1> to vector<8x256xi1>
      %377 = vector.broadcast %cst_167 : f32 to vector<8x256xf32>
      %378 = arith.select %376, %374, %377 : vector<8x256xi1>, vector<8x256xf32>
      %c316 = arith.constant 316 : index
      %c0_168 = arith.constant 0 : index
      %379 = vector.load %arg5[%c316, %c0_168] : memref<324x256xf32, #tpu.memory_space<vmem>>, vector<8x256xf32>
      tpu.vector_store %arg5[%c316, %c0_168], %378 {strides = array<i32>} : memref<324x256xf32, #tpu.memory_space<vmem>>, vector<8x256xf32>,
      %380 = arith.index_cast %arg6 : i32 to index
      %c4_169 = arith.constant 4 : index
      %c0_170 = arith.constant 0 : index
      %c0_171 = arith.constant 0 : index
      %381 = vector.load %arg2[%380, %c4_169, %c0_170, %c0_171] : memref<3x5x8x324xf32, #tpu.memory_space<vmem>>, vector<1x1x8x324xf32>
      %382 = vector.shape_cast %381 : vector<1x1x8x324xf32> to vector<8x324xf32>
      %383 = vector.extract_strided_slice %382 {offsets = [0, 0], sizes = [4, 324], strides = [1, 1]} : vector<8x324xf32> to vector<4x324xf32>
      %384 = arith.index_cast %arg6 : i32 to index
      %c4_172 = arith.constant 4 : index
      %c0_173 = arith.constant 0 : index
      %c0_174 = arith.constant 0 : index
      %385 = vector.load %arg3[%384, %c4_172, %c0_173, %c0_174] : memref<3x5x8x1xf32, #tpu.memory_space<vmem>>, vector<1x1x8x1xf32>
      %386 = vector.shape_cast %385 : vector<1x1x8x1xf32> to vector<8x1xf32>
      %387 = vector.extract_strided_slice %386 {offsets = [0, 0], sizes = [4, 1], strides = [1, 1]} : vector<8x1xf32> to vector<4x1xf32>
      %c0_175 = arith.constant 0 : index
      %c0_176 = arith.constant 0 : index
      %388 = vector.load %arg5[%c0_175, %c0_176] : memref<324x256xf32, #tpu.memory_space<vmem>>, vector<324x256xf32>
      %cst_177 = arith.constant dense<0.000000e+00> : vector<4x256xf32>
      %389 = tpu.matmul %383, %388, %cst_177 {dimension_numbers = #tpu.dot_dimension_numbers<[1], [0], [0], [1], [0, 0, 1, 1], [], []>} : vector<4x324xf32>, vector<324x256xf32>, vector<4x256xf32> -> vector<4x256xf32>
      %390 = vector.broadcast %387 : vector<4x1xf32> to vector<4x256xf32>
      %391 = arith.addf %389, %390 : vector<4x256xf32>
      %cst_178 = arith.constant 2.000000e-01 : f32
      %392 = vector.broadcast %cst_178 : f32 to vector<4x256xf32>
      %393 = arith.mulf %392, %391 : vector<4x256xf32>
      %394 = arith.addf %arg7, %393 : vector<4x256xf32>
      scf.yield %394 : vector<4x256xf32>
    }
    %c3_i32_8 = arith.constant 3 : i32
    %cst = arith.constant 2.000000e-01 : f32
    %25 = vector.broadcast %cst : f32 to vector<4x256xf32>
    %26 = arith.mulf %25, %24 : vector<4x256xf32>
    %27 = arith.addf %22, %26 : vector<4x256xf32>
    %c0_9 = arith.constant 0 : index
    %c0_10 = arith.constant 0 : index
    %c0_11 = arith.constant 0 : index
    %28 = vector.load %arg4[%c0_9, %c0_10, %c0_11] : memref<1x4x256xf32, #tpu.memory_space<vmem>>, vector<1x4x256xf32>
    %29 = vector.shape_cast %28 : vector<1x4x256xf32> to vector<4x256xf32>
    %30 = vector.shape_cast %27 : vector<4x256xf32> to vector<1x4x256xf32>
    tpu.vector_store %arg4[%c0_9, %c0_10, %c0_11], %30 {strides = array<i32>} : memref<1x4x256xf32, #tpu.memory_space<vmem>>, vector<1x4x256xf32>,
    return
  }
  func.func @transform_0(%arg0: i32) -> (i32, i32, i32) {
    %c0_i32 = arith.constant 0 : i32
    %c0_i32_0 = arith.constant 0 : i32
    %c0_i32_1 = arith.constant 0 : i32
    return %arg0, %c0_i32, %c0_i32_0 : i32, i32, i32
  }
  func.func @transform_1(%arg0: i32) -> (i32, i32, i32, i32) {
    %c0_i32 = arith.constant 0 : i32
    %c0_i32_0 = arith.constant 0 : i32
    %c0_i32_1 = arith.constant 0 : i32
    %c0_i32_2 = arith.constant 0 : i32
    %c0_i32_3 = arith.constant 0 : i32
    return %c0_i32, %c0_i32_0, %c0_i32_1, %c0_i32_2 : i32, i32, i32, i32
  }
  func.func @transform_2(%arg0: i32) -> (i32, i32, i32, i32) {
    %c0_i32 = arith.constant 0 : i32
    %c0_i32_0 = arith.constant 0 : i32
    %c0_i32_1 = arith.constant 0 : i32
    %c0_i32_2 = arith.constant 0 : i32
    %c0_i32_3 = arith.constant 0 : i32
    return %c0_i32, %c0_i32_0, %c0_i32_1, %c0_i32_2 : i32, i32, i32, i32
  }
  func.func @transform_3(%arg0: i32) -> (i32, i32, i32) {
    %c0_i32 = arith.constant 0 : i32
    %c0_i32_0 = arith.constant 0 : i32
    %c0_i32_1 = arith.constant 0 : i32
    return %arg0, %c0_i32, %c0_i32_0 : i32, i32, i32
  }
}

</mosaic_0001>

<bundles_post_ra>
// kernel: rrdb_forward_nchw.1
= control target key start
LH: loop header
LB: loop body
LE: loop exit
PB: predicated region body
PF: predicated region fallthrough
CT: control target
= control target key end

     0   :  { %s2027_s12 = smov 0   ;;  %s2731_s0 = inlined_call_operand.vmem [shape: f32[2,4,256], index: 0, kind: input, shape index: {}]   ;;  %s2732_s1 = inlined_call_operand.vmem [shape: f32[3,5,8,324], index: 1, kind: input, shape index: {}]   ;;  %s2733_s2 = inlined_call_operand.vmem [shape: f32[3,5,8,1], index: 2, kind: input, shape index: {}]   ;;  %s2734_s3 = inlined_call_operand.vmem [shape: f32[2,4,256], index: 3, kind: output, shape index: {}]  }
   0x1 LB: > { %s1891_s13 = sadd.s32 4294967295, %s1987_s12   ;;  %p1895_p0 = scmp.ge.s32.totalorder %s1987_s12, 1  ;;  %s1987_s12 = sphi %s2027_s12, %s13_s12  }
   0x2   : > { %p137_p1 = scmp.lt.s32.totalorder %s1987_s12, 3 }
   0x4   : > { %p138_p2 = pnand %p1895_p0, %p137_p1 }
   0x5   : > { %p161_p3 = scmp.lt.s32.totalorder (!%p138_p2), %s1891_s13, 1  ;;  %s2064_s21 = smov (!%p138_p2), 0  }
   0x6   : > { %141 = sbr.rel (%p138_p2) target bundleno = 1863 (0x747), region = 32 }
   0xb   : > { %v171_v0 = vlaneseq  ;;  %s2746_s13 = smov (!%p161_p3, %s1891_s13), 1 }
   0xc   : > { %s1934_s14 = sshll.u32 %s2746_s13, 3 }
   0xd   : > { %v172_v1 = vand.u32 127, %v171_v0  ;;  %s165_s17 = scalar_lea.vmem %s2731_s0, %s1934_s14  ;;  %s2041_s20 = scalar_lea.vmem %s2734_s3, %s1934_s14 }
   0xe   : > { %v2051_v7 = vld [vmem:[%s165_s17] sm:$0xff]  }
   0xf   : > { %v173_v2 = vadd.s32 128, %v172_v1  ;;  %v178_v3 = vand.u32 15, %v172_v1  ;;  %v2743_v10 = vmov %v2051_v7 }
  0x11   : > { %v185_v4 = vand.u32 15, %v173_v2  ;;  %vm2043_vm0 = vcmp.ge.s32.totalorder %v178_v3, 1  ;;  %vm2047_vm1 = vcmp.lt.s32.totalorder %v178_v3, 15 }
  0x13   : > { %vm2053_vm2 = vcmp.ge.s32.totalorder %v185_v4, 1  ;;  %vm2057_vm3 = vcmp.lt.s32.totalorder %v185_v4, 15 }
  0x14 LB: >> { %s1997_s22 = smov 111   ;;  %281 = vst [vmem:[#allocation2 + $0xe8] sm:$0xf] %v1991_v10  ;;  %v211_v11 = vcombine.high %v1991_v10, %v1991_v10  ;;  %s1998_s23 = smov 127   ;;  %v2005_v12 = vmov 0.0   ;;  %v2006_v13 = vmov 0   ;;  %s1995_s21 = sphi %s2064_s21, %s208_s21   ;;  %v1991_v10 = vphi %v2743_v10, %v2744_v10  }
  0x15   : >> { %330 = vrot.lane.b32.xlu1 %v1991_v10, %s1997_s22  ;;  %s1999_s24 = smov 112   ;;  %s2000_s25 = smov 113   ;;  %440 = vmatprep.mubr.f32.mxu0 %v2005_v12  ;;  %vm334_vm4 = vcmask 908288   ;;  %vm287_vm5 = vcmask 1039360   ;;  %vm319_vm6 = vcmask 916480   ;;  %vm306_vm7 = vcmask 924672  }
  0x16   : >> { %332 = vrot.lane.b32.xlu0 %v211_v11, %s1997_s22  ;;  %282 = vst [vmem:[#allocation2 + $0xf0] sm:$0xf] %v211_v11  ;;  %s2001_s26 = smov 1   ;;  %s2002_s27 = smov 15   ;;  %729 = vmatprep.mubr.f32.mxu1 %v2005_v12  ;;  %vm369_vm8 = vcmask 1043456   ;;  %vm265_vm9 = vcmask 7168  }
  0x17   : >> { %s2003_s28 = smov 16   ;;  %s2004_s29 = smov 17   ;;  %1972 = vset.pattern.permute.xlu1 %v2006_v13  ;;  %1971 = vset.pattern.permute.xlu0 %v2006_v13  ;;  %vm248_vm10 = vcmask 121856   ;;  %vm233_vm11 = vcmask 130048   ;;  %vm216_vm12 = vcmask 138240   ;;  %vm365_vm13 = vcmask 293888  }
  0x18   : >> { %s347_s30 = smul.u32 40, %s1995_s21 }
  0x19   : >> { %285 = vrot.lane.b32.xlu1 %v211_v11, %s1998_s23  ;;  %s1936_s7 = smul.u32 120, %s1995_s21  ;;  %s208_s21 = sadd.s32 1, %s1995_s21  }
  0x1a   : >> { %317 = vrot.lane.b32.xlu0 %v211_v11, %s1999_s24  ;;  %s2105_s6 = scalar_lea.vmem %s2733_s2, %s347_s30  ;;  %p205_p4 = scmp.ge.s32.totalorder %s208_s21, 3  }
  0x1b   : >> { %v349_v14 = vld [vmem:[%s2105_s6] sm:$0xff]  ;;  %s2172_s10 = scalar_lea.vmem %s2732_s1, %s1936_s7 }
  0x1d   : >> { %315 = vrot.lane.b32.xlu1 %v1991_v10, %s1999_s24 }
  0x1e   : >> { %304 = vrot.lane.b32.xlu0 %v211_v11, %s2000_s25 }
  0x21   : >> { %302 = vrot.lane.b32.xlu1 %v1991_v10, %s2000_s25 }
  0x22   : >> { %283 = vrot.lane.b32.xlu0 %v1991_v10, %s1998_s23 }
  0x25   : >> { %263 = vrot.lane.b32.xlu1 %v211_v11, %s2001_s26 }
  0x26   : >> { %261 = vrot.lane.b32.xlu0 %v1991_v10, %s2001_s26 }
  0x29   : >> { %246 = vrot.lane.b32.xlu1 %v211_v11, %s2002_s27 }
  0x2a   : >> { %244 = vrot.lane.b32.xlu0 %v1991_v10, %s2002_s27 }
  0x2d   : >> { %231 = vrot.lane.b32.xlu1 %v211_v11, %s2003_s28 }
  0x2e   : >> { %229 = vrot.lane.b32.xlu0 %v1991_v10, %s2003_s28 }
  0x31   : >> { %214 = vrot.lane.b32.xlu1 %v211_v11, %s2004_s29 }
  0x32   : >> { %212 = vrot.lane.b32.xlu0 %v1991_v10, %s2004_s29 }
  0x36   : >> { %362 = vperm.xlu0 %1971, %v349_v14  }
  0x87   : >> { %v331_v15 = vpop.permute.xlu1 %330 }
  0x88   : >> { %v333_v16 = vpop.permute.xlu0 %332 }
  0x89   : >> { %v335_v17 = vsel %vm334_vm4, %v331_v15, %v333_v16  ;;  %v338_v18 = vsel %vm334_vm4, %v333_v16, 0.0 }
  0x8a   : >> { %v339_v19 = vsel %vm2047_vm1, %v335_v17, 0.0  ;;  %v340_v20 = vsel %vm2057_vm3, %v338_v18, 0.0 }
  0x8b   : >> { %v286_v21 = vpop.permute.xlu1 %285  ;;  %341 = vst [vmem:[#allocation2 + $0xd8] sm:$0xf] %v339_v19  ;;  %342 = vst [vmem:[#allocation2 + $0x288] sm:$0xf] %v340_v20  ;;  %v346_v20 = vld [vmem:[%s2172_s10] sm:$0xff] }
  0x8c   : >> { %v291_v22 = vsel %vm287_vm5, %v286_v21, 0.0  ;;  %v318_v24 = vpop.permute.xlu0 %317 }
  0x8d   : >> { %v293_v23 = vsel %vm2057_vm3, %v291_v22, 0.0  ;;  %v322_v26 = vsel %vm319_vm6, %v318_v24, 0.0 }
  0x8e   : >> { %v297_v25 = vrot.slane %v293_v23, 4  ;;  %v325_v27 = vrot.slane %v322_v26, 4 }
  0x8f   : >> { %v316_v28 = vpop.permute.xlu1 %315 }
  0x90   : >> { %301 = vst [vmem:[#allocation2 + $0xf0] sm:$0xf0] %v297_v25  ;;  %v320_v29 = vsel %vm319_vm6, %v316_v28, %v318_v24  ;;  %329 = vst [vmem:[#allocation2 + $0x120] sm:$0xf0] %v325_v27  ;;  %v305_v31 = vpop.permute.xlu0 %304 }
  0x91   : >> { %v324_v30 = vrot.slane %v320_v29, 4  ;;  %v310_v32 = vsel %vm306_vm7, %v305_v31, 0.0 }
  0x92   : >> { %v312_v33 = vsel %vm2053_vm2, %v310_v32, 0.0  ;;  %v359_v35 = vld [vmem:[#allocation2 + $0x288] sm:$0xf]  ;;  %v358_v36 = vld [vmem:[#allocation2 + $0xd8] sm:$0xf] }
  0x93   : >> { %328 = vst [vmem:[#allocation2 + $0x70] sm:$0xf0] %v324_v30  ;;  %v303_v34 = vpop.permute.xlu1 %302  ;;  %314 = vst [vmem:[#allocation2 + $0x120] sm:$0xf] %v312_v33  ;;  %1901 = vmatprep.subr.msk.mxu0 %vm369_vm8, %v359_v35  ;;  %v1906_v32 = vld [vmem:[%s2105_s6 + $0x8] sm:$0xff] }
  0x94   : >> { %v307_v37 = vsel %vm306_vm7, %v303_v34, %v305_v31  ;;  %1902 = vmatpush1.msk.msra.mxu0 %vm369_vm8, %v358_v36  ;;  %v284_v39 = vpop.permute.xlu0 %283 }
  0x95   : >> { %v311_v38 = vsel %vm2043_vm0, %v307_v37, 0.0  ;;  %v288_v40 = vsel %vm287_vm5, %v284_v39, %v286_v21 }
  0x96   : >> { %313 = vst [vmem:[#allocation2 + $0x70] sm:$0xf] %v311_v38  ;;  %v292_v41 = vsel %vm2047_vm1, %v288_v40, 0.0 }
  0x97   : >> { %v264_v42 = vpop.permute.xlu1 %263  ;;  %v296_v43 = vrot.slane %v292_v41, 4  ;;  %v2144_v57 = vld [vmem:[#allocation2 + $0xf0] sm:$0xff] }
  0x98   : >> { %v262_v44 = vpop.permute.xlu0 %261 }
  0x99   : >> { %300 = vst [vmem:[#allocation2 + $0xe8] sm:$0xf0] %v296_v43  ;;  %v266_v45 = vsel %vm265_vm9, %v262_v44, %v264_v42  ;;  %v269_v46 = vsel %vm265_vm9, 0.0, %v262_v44 }
  0x9a   : >> { %v270_v47 = vsel %vm2043_vm0, %v269_v46, 0.0  ;;  %v271_v48 = vsel %vm2053_vm2, %v266_v45, 0.0  ;;  %v2136_v49 = vld [vmem:[#allocation2 + $0x120] sm:$0xff] }
  0x9b   : >> { %v247_v50 = vpop.permute.xlu1 %246  ;;  %v274_v51 = vrot.slane %v270_v47, 4  ;;  %v275_v52 = vrot.slane %v271_v48, 4  ;;  %400 = vmatprep.subr.mxu0 %v2136_v49 }
  0x9c   : >> { %v245_v53 = vpop.permute.xlu0 %244 }
  0x9d   : >> { %v2139_v54 = vld [vmem:[#allocation2 + $0x70] sm:$0xff]  ;;  %278 = vst [vmem:[#allocation2 + $0x40] sm:$0xf0] %v274_v51  ;;  %279 = vst [vmem:[#allocation2 + $0x28] sm:$0xf0] %v275_v52  ;;  %v249_v55 = vsel %vm248_vm10, %v245_v53, %v247_v50  ;;  %v252_v56 = vsel %vm248_vm10, 0.0, %v245_v53 }
  0x9e   : >> { %401 = vmatpush1.msra.mxu0 %v2139_v54  ;;  %v257_v58 = vsel %vm2047_vm1, %v252_v56, 0.0  ;;  %v258_v59 = vsel %vm2057_vm3, %v249_v55, 0.0 }
  0x9f   : >> { %402 = vmatprep.subr.mxu0 %v2144_v57  ;;  %v232_v60 = vpop.permute.xlu1 %231  ;;  %259 = vst [vmem:[#allocation2 + $0x40] sm:$0xf] %v257_v58  ;;  %260 = vst [vmem:[#allocation2 + $0x28] sm:$0xf] %v258_v59 }
  0xa0   : >> { %v230_v61 = vpop.permute.xlu0 %229  ;;  %v2151_v62 = vld [vmem:[#allocation2 + $0xe8] sm:$0xff] }
  0xa1   : >> { %v234_v63 = vsel %vm233_vm11, %v230_v61, %v232_v60  ;;  %v236_v0 = vsel %vm233_vm11, 0.0, %v230_v61  ;;  %403 = vmatpush1.msra.mxu0 %v2151_v62 }
  0xa2   : >> { %v238_v1 = vrot.slane %v236_v0, 4  ;;  %v239_v2 = vrot.slane %v234_v63, 4 }
  0xa3   : >> { %v215_v3 = vpop.permute.xlu1 %214 }
  0xa4   : >> { %242 = vst [vmem:[#allocation2 + $0xc8] sm:$0xf0] %v238_v1  ;;  %243 = vst [vmem:[#allocation2 + $0x8] sm:$0xf0] %v239_v2  ;;  %v213_v4 = vpop.permute.xlu0 %212 }
  0xa5   : >> { %v217_v11 = vsel %vm216_vm12, %v213_v4, %v215_v3  ;;  %v220_v13 = vsel %vm216_vm12, 0.0, %v213_v4 }
  0xa6   : >> { %v225_v14 = vsel %vm2043_vm0, %v220_v13, 0.0  ;;  %v226_v15 = vsel %vm2053_vm2, %v217_v11, 0.0  ;;  %v2162_v16 = vld [vmem:[#allocation2 + $0x28] sm:$0xff]  ;;  %v2164_v17 = vld [vmem:[#allocation2 + $0x40] sm:$0xff] }
  0xa7   : >> { %227 = vst [vmem:[#allocation2 + $0xc8] sm:$0xf] %v225_v14  ;;  %228 = vst [vmem:[#allocation2 + $0x8] sm:$0xf] %v226_v15  ;;  %404 = vmatprep.subr.mxu0 %v2162_v16 }
  0xa8   : >> { %405 = vmatpush1.msra.mxu0 %v2164_v17 }
  0xae   : >> { %v2174_v18 = vld [vmem:[#allocation2 + $0x8] sm:$0xff] }
  0xaf   : >> { %v2176_v19 = vld [vmem:[#allocation2 + $0xc8] sm:$0xff]  ;;  %406 = vmatprep.subr.mxu0 %v2174_v18 }
  0xb0   : >> { %407 = vmatpush1.msra.mxu0 %v2176_v19 }
  0xb1   : >> { %1903 = vmatmul.mubr.msk.f32.vlgmr.msra.gmra.mxu0 %vm365_vm13, %v346_v20  ;;  %v363_v21 = vpop.permute.xlu0 %362  ;;  %vm655_vm13 = vcmask 883712  }
 0x171   : >> { %v442_v22 = vpop.f32.mrf.mxu0 }
 0x172   : >> { %v443_v23 = vadd.f32 %v442_v22, %v363_v21 }
 0x173   : >> { %v444_v24 = vpop.f32.mrf.mxu0 }
 0x174   : >> { %vm447_vm14 = vcmp.ge.f32.partialorder %v443_v23, 0.0  ;;  %v449_v25 = vmul.f32 0.2, %v443_v23  ;;  %v445_v26 = vadd.f32 %v444_v24, %v363_v21 }
 0x176   : >> { %v451_v27 = vsel %vm447_vm14, %v443_v23, %v449_v25  ;;  %vm448_vm15 = vcmp.ge.f32.partialorder %v445_v26, 0.0  ;;  %v450_v28 = vmul.f32 0.2, %v445_v26 }
 0x177   : >> { %v531_v29 = vrot.slane %v451_v27, 4  ;;  %579 = vrot.lane.b32.xlu0 %v451_v27, %s1999_s24  ;;  %595 = vrot.lane.b32.xlu1 %v451_v27, %s1997_s22 }
 0x178   : >> { %v452_v30 = vsel %vm448_vm15, %v445_v26, %v450_v28 }
 0x179   : >> { %535 = vst [vmem:[#allocation2 + $0x78] ss:$404 sps:$4 sm:$0xff] %v531_v29   ;;  %v532_v31 = vrot.slane %v452_v30, 4 }
 0x17b   : >> { %536 = vst [vmem:[#allocation2 + $0xe0] ss:$-84 sps:$4 sm:$0xff] %v532_v31   ;;  %511 = vrot.lane.b32.xlu0 %v451_v27, %s2001_s26  ;;  %559 = vrot.lane.b32.xlu1 %v451_v27, %s2000_s25 }
 0x17f   : >> { %581 = vrot.lane.b32.xlu0 %v452_v30, %s1999_s24  ;;  %539 = vrot.lane.b32.xlu1 %v451_v27, %s1998_s23 }
 0x183   : >> { %541 = vrot.lane.b32.xlu0 %v452_v30, %s1998_s23  ;;  %597 = vrot.lane.b32.xlu1 %v452_v30, %s1997_s22 }
 0x187   : >> { %491 = vrot.lane.b32.xlu0 %v451_v27, %s2002_s27  ;;  %561 = vrot.lane.b32.xlu1 %v452_v30, %s2000_s25 }
 0x18b   : >> { %475 = vrot.lane.b32.xlu0 %v451_v27, %s2003_s28  ;;  %513 = vrot.lane.b32.xlu1 %v452_v30, %s2001_s26 }
 0x18f   : >> { %455 = vrot.lane.b32.xlu0 %v451_v27, %s2004_s29  ;;  %493 = vrot.lane.b32.xlu1 %v452_v30, %s2002_s27 }
 0x193   : >> { %652 = vperm.xlu0 %1971, %v1906_v32   ;;  %477 = vrot.lane.b32.xlu1 %v452_v30, %s2003_s28 }
 0x197   : >> { %457 = vrot.lane.b32.xlu1 %v452_v30, %s2004_s29 }
 0x1e9   : >> { %v580_v33 = vpop.permute.xlu0 %579  ;;  %v596_v34 = vpop.permute.xlu1 %595 }
 0x1ed   : >> { %v512_v35 = vpop.permute.xlu0 %511  ;;  %v560_v36 = vpop.permute.xlu1 %559 }
 0x1ee   : >> { %v518_v37 = vsel %vm265_vm9, 0.0, %v512_v35 }
 0x1ef   : >> { %v519_v38 = vsel %vm2043_vm0, %v518_v37, 0.0 }
 0x1f0   : >> { %v523_v39 = vrot.slane %v519_v38, 4 }
 0x1f1   : >> { %v582_v40 = vpop.permute.xlu0 %581  ;;  %v540_v41 = vpop.permute.xlu1 %539 }
 0x1f2   : >> { %527 = vst [vmem:[#allocation2 + $0x208] ss:$-516 sps:$4 sm:$0xff] %v523_v39   ;;  %v583_v42 = vsel %vm319_vm6, %v580_v33, %v582_v40  ;;  %v585_v43 = vsel %vm319_vm6, %v582_v40, 0.0 }
 0x1f3   : >> { %v587_v44 = vrot.slane %v583_v42, 4  ;;  %v588_v45 = vrot.slane %v585_v43, 4 }
 0x1f5   : >> { %591 = vst [vmem:[#allocation2 + $0x220] ss:$-116 sps:$4 sm:$0xff] %v587_v44   ;;  %592 = vst [vmem:[#allocation2 + $0x198] ss:$188 sps:$4 sm:$0xff] %v588_v45   ;;  %v542_v46 = vpop.permute.xlu0 %541  ;;  %v598_v47 = vpop.permute.xlu1 %597 }
 0x1f6   : >> { %v543_v48 = vsel %vm287_vm5, %v540_v41, %v542_v46  ;;  %v546_v50 = vsel %vm287_vm5, %v542_v46, 0.0  ;;  %v599_v51 = vsel %vm334_vm4, %v596_v34, %v598_v47  ;;  %v602_v52 = vsel %vm334_vm4, %v598_v47, 0.0 }
 0x1f7   : >> { %v547_v53 = vsel %vm2047_vm1, %v543_v48, 0.0  ;;  %v548_v55 = vsel %vm2057_vm3, %v546_v50, 0.0  ;;  %v603_v56 = vsel %vm2047_vm1, %v599_v51, 0.0  ;;  %v604_v58 = vsel %vm2057_vm3, %v602_v52, 0.0 }
 0x1f8   : >> { %v551_v59 = vrot.slane %v547_v53, 4  ;;  %v552_v60 = vrot.slane %v548_v55, 4  ;;  %v607_v61 = vrot.slane %v603_v56, 4  ;;  %v608_v63 = vrot.slane %v604_v58, 4 }
 0x1f9   : >> { %v492_v0 = vpop.permute.xlu0 %491  ;;  %v562_v1 = vpop.permute.xlu1 %561  ;;  %v2267_v58 = vld [vmem:[#allocation2 + $0x208] sm:$0xff] }
 0x1fa   : >> { %555 = vst [vmem:[#allocation2 + $0x168] ss:$-236 sps:$4 sm:$0xff] %v551_v59   ;;  %556 = vst [vmem:[#allocation2 + $0x1e0] ss:$-252 sps:$4 sm:$0xff] %v552_v60   ;;  %v498_v2 = vsel %vm248_vm10, 0.0, %v492_v0  ;;  %v563_v3 = vsel %vm306_vm7, %v560_v36, %v562_v1  ;;  %v566_v4 = vsel %vm306_vm7, %v562_v1, 0.0 }
 0x1fb   : >> { %611 = vst [vmem:[#allocation2 + $0x50] ss:$468 sps:$4 sm:$0xff] %v607_v61   ;;  %612 = vst [vmem:[#allocation2 + $0x30] ss:$364 sps:$4 sm:$0xff] %v608_v63   ;;  %v499_v11 = vsel %vm2047_vm1, %v498_v2, 0.0  ;;  %v567_v13 = vsel %vm2043_vm0, %v563_v3, 0.0 }
 0x1fc   : >> { %v568_v14 = vsel %vm2053_vm2, %v566_v4, 0.0  ;;  %v503_v15 = vrot.slane %v499_v11, 4  ;;  %v571_v20 = vrot.slane %v567_v13, 4  ;;  %v1905_v4 = vld [vmem:[%s2172_s10 + $0x18] sm:$0xff] }
 0x1fd   : >> { %v572_v21 = vrot.slane %v568_v14, 4  ;;  %v476_v22 = vpop.permute.xlu0 %475  ;;  %v514_v23 = vpop.permute.xlu1 %513 }
 0x1fe   : >> { %507 = vst [vmem:[#allocation2] ss:$276 sps:$4 sm:$0xff] %v503_v15   ;;  %575 = vst [vmem:[#allocation2 + $0x1a8] ss:$-60 sps:$4 sm:$0xff] %v571_v20   ;;  %v481_v24 = vsel %vm233_vm11, 0.0, %v476_v22  ;;  %v515_v25 = vsel %vm265_vm9, %v512_v35, %v514_v23 }
 0x1ff   : >> { %576 = vst [vmem:[#allocation2 + $0x250] ss:$-108 sps:$4 sm:$0xff] %v572_v21   ;;  %v483_v26 = vrot.slane %v481_v24, 4  ;;  %v520_v27 = vsel %vm2053_vm2, %v515_v25, 0.0 }
 0x200   : >> { %v524_v28 = vrot.slane %v520_v27, 4  ;;  %v1912_v27 = vld [vmem:[%s2172_s10 + $0x38] sm:$0xff] }
 0x201   : >> { %487 = vst [vmem:[#allocation2 + $0x110] ss:$68 sps:$4 sm:$0xff] %v483_v26   ;;  %v456_v29 = vpop.permute.xlu0 %455  ;;  %v494_v30 = vpop.permute.xlu1 %493  ;;  %v2255_v50 = vld [vmem:[#allocation2 + $0xe0] sm:$0xff]  ;;  %v2259_v52 = vld [vmem:[#allocation2 + $0x78] sm:$0xff] }
 0x202   : >> { %v649_v31 = vld [vmem:[#allocation2 + $0x30] sm:$0xf]  ;;  %528 = vst [vmem:[#allocation2 + $0x88] ss:$196 sps:$4 sm:$0xff] %v524_v28   ;;  %v462_v33 = vsel %vm216_vm12, 0.0, %v456_v29  ;;  %v495_v34 = vsel %vm248_vm10, %v492_v0, %v494_v30  ;;  %v2236_v37 = vld [vmem:[#allocation2 + $0x198] sm:$0xff] }
 0x203   : >> { %v648_v32 = vld [vmem:[#allocation2 + $0x50] sm:$0xf]  ;;  %1907 = vmatprep.subr.msk.mxu1 %vm369_vm8, %v649_v31  ;;  %v463_v35 = vsel %vm2043_vm0, %v462_v33, 0.0  ;;  %v500_v36 = vsel %vm2057_vm3, %v495_v34, 0.0  ;;  %v2239_v40 = vld [vmem:[#allocation2 + $0x220] sm:$0xff] }
 0x204   : >> { %1908 = vmatpush1.msk.msra.mxu1 %vm369_vm8, %v648_v32  ;;  %v467_v38 = vrot.slane %v463_v35, 4  ;;  %v504_v39 = vrot.slane %v500_v36, 4  ;;  %v1913_v28 = vld [vmem:[%s2105_s6 + $0x10] sm:$0xff] }
 0x205   : >> { %671 = vmatprep.subr.mxu1 %v2236_v37  ;;  %v478_v41 = vpop.permute.xlu1 %477  ;;  %v2244_v43 = vld [vmem:[#allocation2 + $0x1a8] sm:$0xff]  ;;  %v2273_v60 = vld [vmem:[#allocation2] sm:$0xff] }
 0x206   : >> { %672 = vmatpush1.msra.mxu1 %v2239_v40  ;;  %v2242_v42 = vld [vmem:[#allocation2 + $0x250] sm:$0xff]  ;;  %471 = vst [vmem:[#allocation2 + $0x150] ss:$-116 sps:$4 sm:$0xff] %v467_v38   ;;  %508 = vst [vmem:[#allocation2 + $0x148] ss:$228 sps:$4 sm:$0xff] %v504_v39   ;;  %v479_v44 = vsel %vm233_vm11, %v476_v22, %v478_v41  ;;  %v2249_v46 = vld [vmem:[#allocation2 + $0x1e0] sm:$0xff] }
 0x207   : >> { %673 = vmatprep.subr.mxu1 %v2242_v42  ;;  %v484_v45 = vrot.slane %v479_v44, 4  ;;  %v2252_v47 = vld [vmem:[#allocation2 + $0x168] sm:$0xff] }
 0x208   : >> { %674 = vmatpush1.msra.mxu1 %v2244_v43  ;;  %v2279_v63 = vld [vmem:[#allocation2 + $0x110] sm:$0xff] }
 0x209   : >> { %675 = vmatprep.subr.mxu1 %v2249_v46  ;;  %488 = vst [vmem:[#allocation2 + $0x228] ss:$-196 sps:$4 sm:$0xff] %v484_v45   ;;  %v458_v48 = vpop.permute.xlu1 %457  ;;  %v2264_v55 = vld [vmem:[#allocation2 + $0x88] sm:$0xff] }
 0x20a   : >> { %676 = vmatpush1.msra.mxu1 %v2252_v47  ;;  %v459_v51 = vsel %vm216_vm12, %v456_v29, %v458_v48 }
 0x20b   : >> { %677 = vmatprep.subr.mxu1 %v2255_v50  ;;  %v464_v53 = vsel %vm2053_vm2, %v459_v51, 0.0 }
 0x20c   : >> { %678 = vmatpush1.msra.mxu1 %v2259_v52  ;;  %v468_v56 = vrot.slane %v464_v53, 4 }
 0x20d   : >> { %679 = vmatprep.subr.mxu1 %v2264_v55  ;;  %v2270_v59 = vld [vmem:[#allocation2 + $0x148] sm:$0xff]  ;;  %v2285_v1 = vld [vmem:[#allocation2 + $0x150] sm:$0xff]  ;;  %v2291_v3 = vld [vmem:[#allocation2 + $0xd8] sm:$0xff] }
 0x20e   : >> { %680 = vmatpush1.msra.mxu1 %v2267_v58  ;;  %472 = vst [vmem:[#allocation2 + $0x160] ss:$300 sps:$4 sm:$0xff] %v468_v56   ;;  %v653_v11 = vpop.permute.xlu0 %652 }
 0x20f   : >> { %681 = vmatprep.subr.mxu1 %v2270_v59 }
 0x210   : >> { %682 = vmatpush1.msra.mxu1 %v2273_v60  ;;  %v2276_v61 = vld [vmem:[#allocation2 + $0x228] sm:$0xff] }
 0x211   : >> { %683 = vmatprep.subr.mxu1 %v2276_v61 }
 0x212   : >> { %684 = vmatpush1.msra.mxu1 %v2279_v63 }
 0x215   : >> { %v2282_v0 = vld [vmem:[#allocation2 + $0x160] sm:$0xff]  ;;  %v2288_v2 = vld [vmem:[#allocation2 + $0x288] sm:$0xff] }
 0x216   : >> { %685 = vmatprep.subr.mxu1 %v2282_v0 }
 0x217   : >> { %686 = vmatpush1.msra.mxu1 %v2285_v1 }
 0x218   : >> { %687 = vmatprep.subr.mxu1 %v2288_v2 }
 0x219   : >> { %688 = vmatpush1.msra.mxu1 %v2291_v3 }
 0x21a   : >> { %689 = vmatprep.subr.mxu1 %v2136_v49 }
 0x21b   : >> { %690 = vmatpush1.msra.mxu1 %v2139_v54 }
 0x21c   : >> { %691 = vmatprep.subr.mxu1 %v2144_v57 }
 0x21d   : >> { %692 = vmatpush1.msra.mxu1 %v2151_v62 }
 0x21e   : >> { %693 = vmatprep.subr.mxu1 %v2162_v16 }
 0x21f   : >> { %694 = vmatpush1.msra.mxu1 %v2164_v17 }
 0x220   : >> { %695 = vmatprep.subr.mxu1 %v2174_v18 }
 0x221   : >> { %696 = vmatpush1.msra.mxu1 %v2176_v19 }
 0x222   : >> { %1909 = vmatmul.mubr.msk.f32.vlgmr.msra.gmra.mxu1 %vm655_vm13, %v1905_v4  ;;  %vm963_vm13 = vcmask 424960  }
 0x223   : >> { %1916 = vmatprep.mubr.msk.f32.mxu0 %vm963_vm13, %v1912_v27  ;;  %vm1289_vm13 = vcmask 1014784  }
 0x2e2   : >> { %v731_v13 = vpop.f32.mrf.mxu1 }
 0x2e3   : >> { %v732_v14 = vadd.f32 %v731_v13, %v653_v11 }
 0x2e4   : >> { %v733_v15 = vpop.f32.mrf.mxu1 }
 0x2e5   : >> { %vm736_vm14 = vcmp.ge.f32.partialorder %v732_v14, 0.0  ;;  %v738_v20 = vmul.f32 0.2, %v732_v14  ;;  %v734_v21 = vadd.f32 %v733_v15, %v653_v11 }
 0x2e7   : >> { %v740_v22 = vsel %vm736_vm14, %v732_v14, %v738_v20  ;;  %vm737_vm15 = vcmp.ge.f32.partialorder %v734_v21, 0.0  ;;  %v739_v23 = vmul.f32 0.2, %v734_v21 }
 0x2e8   : >> { %v820_v24 = vrot.slane %v740_v22, 4  ;;  %780 = vrot.lane.b32.xlu1 %v740_v22, %s2002_s27 }
 0x2e9   : >> { %v741_v25 = vsel %vm737_vm15, %v734_v21, %v739_v23 }
 0x2ea   : >> { %824 = vst [vmem:[#allocation2 + $0x1a0] ss:$-252 sps:$4 sm:$0xff] %v820_v24   ;;  %v821_v26 = vrot.slane %v741_v25, 4  ;;  %782 = vrot.lane.b32.xlu0 %v741_v25, %s2002_s27 }
 0x2ec   : >> { %825 = vst [vmem:[#allocation2 + $0x1d8] ss:$-436 sps:$4 sm:$0xff] %v821_v26   ;;  %764 = vrot.lane.b32.xlu1 %v740_v22, %s2003_s28 }
 0x2ee   : >> { %766 = vrot.lane.b32.xlu0 %v741_v25, %s2003_s28 }
 0x2f0   : >> { %744 = vrot.lane.b32.xlu1 %v740_v22, %s2004_s29 }
 0x2f2   : >> { %746 = vrot.lane.b32.xlu0 %v741_v25, %s2004_s29 }
 0x2f4   : >> { %868 = vrot.lane.b32.xlu1 %v740_v22, %s1999_s24 }
 0x2f6   : >> { %884 = vrot.lane.b32.xlu0 %v740_v22, %s1997_s22 }
 0x2f8   : >> { %886 = vrot.lane.b32.xlu1 %v741_v25, %s1997_s22 }
 0x2fa   : >> { %848 = vrot.lane.b32.xlu0 %v740_v22, %s2000_s25 }
 0x2fc   : >> { %870 = vrot.lane.b32.xlu1 %v741_v25, %s1999_s24 }
 0x2fe   : >> { %850 = vrot.lane.b32.xlu0 %v741_v25, %s2000_s25 }
 0x300   : >> { %830 = vrot.lane.b32.xlu1 %v741_v25, %s1998_s23 }
 0x302   : >> { %828 = vrot.lane.b32.xlu0 %v740_v22, %s1998_s23 }
 0x304   : >> { %800 = vrot.lane.b32.xlu1 %v740_v22, %s2001_s26 }
 0x306   : >> { %802 = vrot.lane.b32.xlu0 %v741_v25, %s2001_s26 }
 0x308   : >> { %960 = vperm.xlu1 %1972, %v1913_v28  }
 0x35a   : >> { %v781_v29 = vpop.permute.xlu1 %780 }
 0x35b   : >> { %v787_v30 = vsel %vm248_vm10, 0.0, %v781_v29 }
 0x35c   : >> { %v788_v31 = vsel %vm2047_vm1, %v787_v30, 0.0  ;;  %v783_v32 = vpop.permute.xlu0 %782 }
 0x35d   : >> { %v792_v33 = vrot.slane %v788_v31, 4  ;;  %v784_v34 = vsel %vm248_vm10, %v781_v29, %v783_v32 }
 0x35e   : >> { %v789_v35 = vsel %vm2057_vm3, %v784_v34, 0.0  ;;  %v765_v36 = vpop.permute.xlu1 %764 }
 0x35f   : >> { %796 = vst [vmem:[#allocation2 + $0x270] ss:$-20 sps:$4 sm:$0xff] %v792_v33   ;;  %v793_v38 = vrot.slane %v789_v35, 4  ;;  %v770_v39 = vsel %vm233_vm11, 0.0, %v765_v36 }
 0x360   : >> { %v772_v41 = vrot.slane %v770_v39, 4  ;;  %v767_v44 = vpop.permute.xlu0 %766 }
 0x361   : >> { %797 = vst [vmem:[#allocation2 + $0x100] ss:$-60 sps:$4 sm:$0xff] %v793_v38   ;;  %v768_v45 = vsel %vm233_vm11, %v765_v36, %v767_v44 }
 0x362   : >> { %776 = vst [vmem:[#allocation2 + $0x258] ss:$-20 sps:$4 sm:$0xff] %v772_v41   ;;  %v773_v48 = vrot.slane %v768_v45, 4  ;;  %v745_v51 = vpop.permute.xlu1 %744 }
 0x363   : >> { %v751_v53 = vsel %vm216_vm12, 0.0, %v745_v51 }
 0x364   : >> { %777 = vst [vmem:[#allocation2 + $0xc0] ss:$212 sps:$4 sm:$0xff] %v773_v48   ;;  %v752_v56 = vsel %vm2043_vm0, %v751_v53, 0.0  ;;  %v747_v4 = vpop.permute.xlu0 %746 }
 0x365   : >> { %v756_v11 = vrot.slane %v752_v56, 4  ;;  %v748_v13 = vsel %vm216_vm12, %v745_v51, %v747_v4 }
 0x366   : >> { %v753_v14 = vsel %vm2053_vm2, %v748_v13, 0.0  ;;  %v869_v15 = vpop.permute.xlu1 %868 }
 0x367   : >> { %760 = vst [vmem:[#allocation2 + $0x240] ss:$-492 sps:$4 sm:$0xff] %v756_v11   ;;  %v757_v20 = vrot.slane %v753_v14, 4 }
 0x368   : >> { %v885_v21 = vpop.permute.xlu0 %884 }
 0x369   : >> { %761 = vst [vmem:[#allocation2 + $0x190] ss:$-348 sps:$4 sm:$0xff] %v757_v20   ;;  %v2345_v29 = vld [vmem:[#allocation2 + $0x258] sm:$0xff] }
 0x36a   : >> { %v887_v22 = vpop.permute.xlu1 %886 }
 0x36b   : >> { %v888_v23 = vsel %vm334_vm4, %v885_v21, %v887_v22  ;;  %v891_v24 = vsel %vm334_vm4, %v887_v22, 0.0  ;;  %v2337_v25 = vld [vmem:[#allocation2 + $0xc0] sm:$0xff] }
 0x36c   : >> { %v892_v26 = vsel %vm2047_vm1, %v888_v23, 0.0  ;;  %v893_v27 = vsel %vm2057_vm3, %v891_v24, 0.0  ;;  %v849_v28 = vpop.permute.xlu0 %848  ;;  %973 = vmatprep.subr.mxu0 %v2337_v25  ;;  %1299 = vmatprep.subr.mxu1 %v2337_v25 }
 0x36d   : >> { %v896_v30 = vrot.slane %v892_v26, 4  ;;  %v897_v31 = vrot.slane %v893_v27, 4  ;;  %974 = vmatpush1.msra.mxu0 %v2345_v29  ;;  %1300 = vmatpush1.msra.mxu1 %v2345_v29 }
 0x36e   : >> { %v871_v32 = vpop.permute.xlu1 %870  ;;  %v2357_v45 = vld [vmem:[#allocation2 + $0x240] sm:$0xff]  ;;  %v2370_v14 = vld [vmem:[#allocation2 + $0x50] sm:$0xff] }
 0x36f   : >> { %900 = vst [vmem:[#allocation2 + $0x278] ss:$-188 sps:$4 sm:$0xff] %v896_v30   ;;  %901 = vst [vmem:[#allocation2 + $0x1f0] ss:$-340 sps:$4 sm:$0xff] %v897_v31   ;;  %v872_v33 = vsel %vm319_vm6, %v869_v15, %v871_v32  ;;  %v874_v34 = vsel %vm319_vm6, %v871_v32, 0.0 }
 0x370   : >> { %v876_v35 = vrot.slane %v872_v33, 4  ;;  %v877_v36 = vrot.slane %v874_v34, 4  ;;  %v851_v38 = vpop.permute.xlu0 %850  ;;  %v2351_v39 = vld [vmem:[#allocation2 + $0x190] sm:$0xff] }
 0x371   : >> { %v852_v41 = vsel %vm306_vm7, %v849_v28, %v851_v38  ;;  %v855_v44 = vsel %vm306_vm7, %v851_v38, 0.0  ;;  %975 = vmatprep.subr.mxu0 %v2351_v39  ;;  %1301 = vmatprep.subr.mxu1 %v2351_v39  ;;  %v2365_v56 = vld [vmem:[#allocation2 + $0x30] sm:$0xff] }
 0x372   : >> { %880 = vst [vmem:[#allocation2 + $0x1b8] ss:$124 sps:$4 sm:$0xff] %v876_v35   ;;  %881 = vst [vmem:[#allocation2 + $0x98] ss:$60 sps:$4 sm:$0xff] %v877_v36   ;;  %v856_v48 = vsel %vm2043_vm0, %v852_v41, 0.0  ;;  %v857_v51 = vsel %vm2053_vm2, %v855_v44, 0.0  ;;  %976 = vmatpush1.msra.mxu0 %v2357_v45  ;;  %1302 = vmatpush1.msra.mxu1 %v2357_v45  ;;  %v831_v53 = vpop.permute.xlu1 %830 }
 0x373   : >> { %v860_v4 = vrot.slane %v856_v48, 4  ;;  %v861_v11 = vrot.slane %v857_v51, 4  ;;  %v835_v13 = vsel %vm287_vm5, %v831_v53, 0.0  ;;  %977 = vmatprep.subr.mxu0 %v2365_v56  ;;  %1303 = vmatprep.subr.mxu1 %v2365_v56  ;;  %v1911_v48 = vld [vmem:[%s2172_s10 + $0x30] sm:$0xff] }
 0x374   : >> { %v837_v15 = vsel %vm2057_vm3, %v835_v13, 0.0  ;;  %v829_v20 = vpop.permute.xlu0 %828  ;;  %978 = vmatpush1.msra.mxu0 %v2370_v14  ;;  %1304 = vmatpush1.msra.mxu1 %v2370_v14 }
 0x375   : >> { %864 = vst [vmem:[#allocation2 + $0x230] ss:$-68 sps:$4 sm:$0xff] %v860_v4   ;;  %865 = vst [vmem:[#allocation2 + $0xd0] ss:$228 sps:$4 sm:$0xff] %v861_v11   ;;  %v841_v21 = vrot.slane %v837_v15, 4  ;;  %v832_v22 = vsel %vm287_vm5, %v829_v20, %v831_v53  ;;  %979 = vmatprep.subr.mxu0 %v2236_v37  ;;  %1305 = vmatprep.subr.mxu1 %v2236_v37 }
 0x376   : >> { %v836_v23 = vsel %vm2047_vm1, %v832_v22, 0.0  ;;  %980 = vmatpush1.msra.mxu0 %v2239_v40  ;;  %1306 = vmatpush1.msra.mxu1 %v2239_v40  ;;  %v801_v24 = vpop.permute.xlu1 %800 }
 0x377   : >> { %845 = vst [vmem:[#allocation2 + $0x1b0] ss:$44 sps:$4 sm:$0xff] %v841_v21   ;;  %v840_v26 = vrot.slane %v836_v23, 4  ;;  %v807_v27 = vsel %vm265_vm9, 0.0, %v801_v24  ;;  %981 = vmatprep.subr.mxu0 %v2242_v42  ;;  %1307 = vmatprep.subr.mxu1 %v2242_v42 }
 0x378   : >> { %v808_v28 = vsel %vm2043_vm0, %v807_v27, 0.0  ;;  %v803_v30 = vpop.permute.xlu0 %802  ;;  %982 = vmatpush1.msra.mxu0 %v2244_v43  ;;  %1308 = vmatpush1.msra.mxu1 %v2244_v43 }
 0x379   : >> { %844 = vst [vmem:[#allocation2 + $0x1e8] ss:$-68 sps:$4 sm:$0xff] %v840_v26   ;;  %v812_v31 = vrot.slane %v808_v28, 4  ;;  %v804_v32 = vsel %vm265_vm9, %v801_v24, %v803_v30  ;;  %983 = vmatprep.subr.mxu0 %v2249_v46  ;;  %1309 = vmatprep.subr.mxu1 %v2249_v46 }
 0x37a   : >> { %v809_v33 = vsel %vm2053_vm2, %v804_v32, 0.0  ;;  %984 = vmatpush1.msra.mxu0 %v2252_v47  ;;  %1310 = vmatpush1.msra.mxu1 %v2252_v47 }
 0x37b   : >> { %816 = vst [vmem:[#allocation2 + $0xa0] ss:$468 sps:$4 sm:$0xff] %v812_v31   ;;  %v813_v34 = vrot.slane %v809_v33, 4  ;;  %985 = vmatprep.subr.mxu0 %v2255_v50  ;;  %1311 = vmatprep.subr.mxu1 %v2255_v50 }
 0x37c   : >> { %986 = vmatpush1.msra.mxu0 %v2259_v52  ;;  %1312 = vmatpush1.msra.mxu1 %v2259_v52 }
 0x37d   : >> { %817 = vst [vmem:[#allocation2 + $0x20] ss:$228 sps:$4 sm:$0xff] %v813_v34   ;;  %987 = vmatprep.subr.mxu0 %v2264_v55  ;;  %1313 = vmatprep.subr.mxu1 %v2264_v55 }
 0x37e   : >> { %988 = vmatpush1.msra.mxu0 %v2267_v58  ;;  %1314 = vmatpush1.msra.mxu1 %v2267_v58  ;;  %v2457_v35 = vld [vmem:[#allocation2 + $0x1d8] sm:$0xff] }
 0x37f   : >> { %989 = vmatprep.subr.mxu0 %v2270_v59  ;;  %1315 = vmatprep.subr.mxu1 %v2270_v59 }
 0x380   : >> { %990 = vmatpush1.msra.mxu0 %v2273_v60  ;;  %1316 = vmatpush1.msra.mxu1 %v2273_v60  ;;  %v2460_v36 = vld [vmem:[#allocation2 + $0x1a0] sm:$0xff] }
 0x381   : >> { %991 = vmatprep.subr.mxu0 %v2276_v61  ;;  %1317 = vmatprep.subr.mxu1 %v2276_v61 }
 0x382   : >> { %992 = vmatpush1.msra.mxu0 %v2279_v63  ;;  %1318 = vmatpush1.msra.mxu1 %v2279_v63  ;;  %v2466_v41 = vld [vmem:[#allocation2 + $0xa0] sm:$0xff]  ;;  %v2473_v51 = vld [vmem:[#allocation2 + $0x270] sm:$0xff] }
 0x383   : >> { %993 = vmatprep.subr.mxu0 %v2282_v0  ;;  %1319 = vmatprep.subr.mxu1 %v2282_v0 }
 0x384   : >> { %994 = vmatpush1.msra.mxu0 %v2285_v1  ;;  %1320 = vmatpush1.msra.mxu1 %v2285_v1  ;;  %v2463_v38 = vld [vmem:[#allocation2 + $0x20] sm:$0xff] }
 0x385   : >> { %995 = vmatprep.subr.mxu0 %v2288_v2  ;;  %1321 = vmatprep.subr.mxu1 %v2288_v2  ;;  %v2469_v44 = vld [vmem:[#allocation2 + $0x100] sm:$0xff] }
 0x386   : >> { %996 = vmatpush1.msra.mxu0 %v2291_v3  ;;  %1322 = vmatpush1.msra.mxu1 %v2291_v3 }
 0x387   : >> { %997 = vmatprep.subr.mxu0 %v2136_v49  ;;  %1323 = vmatprep.subr.mxu1 %v2136_v49  ;;  %v957_v49 = vld [vmem:[#allocation2 + $0x1f0] sm:$0xf] }
 0x388   : >> { %998 = vmatpush1.msra.mxu0 %v2139_v54  ;;  %1324 = vmatpush1.msra.mxu1 %v2139_v54  ;;  %v956_v54 = vld [vmem:[#allocation2 + $0x278] sm:$0xf] }
 0x389   : >> { %999 = vmatprep.subr.mxu0 %v2144_v57  ;;  %1325 = vmatprep.subr.mxu1 %v2144_v57  ;;  %v2439_v57 = vld [vmem:[#allocation2 + $0x98] sm:$0xff] }
 0x38a   : >> { %1000 = vmatpush1.msra.mxu0 %v2151_v62  ;;  %1326 = vmatpush1.msra.mxu1 %v2151_v62  ;;  %v2442_v62 = vld [vmem:[#allocation2 + $0x1b8] sm:$0xff] }
 0x38b   : >> { %1001 = vmatprep.subr.mxu0 %v2162_v16  ;;  %1327 = vmatprep.subr.mxu1 %v2162_v16  ;;  %v2445_v16 = vld [vmem:[#allocation2 + $0xd0] sm:$0xff] }
 0x38c   : >> { %1002 = vmatpush1.msra.mxu0 %v2164_v17  ;;  %1328 = vmatpush1.msra.mxu1 %v2164_v17  ;;  %v2448_v17 = vld [vmem:[#allocation2 + $0x230] sm:$0xff] }
 0x38d   : >> { %1003 = vmatprep.subr.mxu0 %v2174_v18  ;;  %1329 = vmatprep.subr.mxu1 %v2174_v18  ;;  %v2451_v18 = vld [vmem:[#allocation2 + $0x1b0] sm:$0xff] }
 0x38e   : >> { %1004 = vmatpush1.msra.mxu0 %v2176_v19  ;;  %1330 = vmatpush1.msra.mxu1 %v2176_v19  ;;  %v2454_v19 = vld [vmem:[#allocation2 + $0x1e8] sm:$0xff] }
 0x38f   : >> { %1914 = vmatprep.subr.msk.mxu0 %vm369_vm8, %v957_v49 }
 0x390   : >> { %1915 = vmatpush2.msk.msra.mxu0 %vm369_vm8, %v956_v54 }
 0x391   : >> { %1025 = vmatprep.subr.mxu0 %v2439_v57 }
 0x392   : >> { %1026 = vmatpush2.msra.mxu0 %v2442_v62 }
 0x393   : >> { %1027 = vmatprep.subr.mxu0 %v2445_v16 }
 0x394   : >> { %1028 = vmatpush2.msra.mxu0 %v2448_v17 }
 0x395   : >> { %1029 = vmatprep.subr.mxu0 %v2451_v18 }
 0x396   : >> { %1030 = vmatpush2.msra.mxu0 %v2454_v19 }
 0x397   : >> { %1031 = vmatprep.subr.mxu0 %v2457_v35 }
 0x398   : >> { %1032 = vmatpush2.msra.mxu0 %v2460_v36 }
 0x399   : >> { %1033 = vmatprep.subr.mxu0 %v2463_v38 }
 0x39a   : >> { %1034 = vmatpush2.msra.mxu0 %v2466_v41 }
 0x39b   : >> { %1035 = vmatprep.subr.mxu0 %v2469_v44 }
 0x39c   : >> { %1036 = vmatpush2.msra.mxu0 %v2473_v51 }
 0x39d   : >> { %1038 = vmatmul.mubr.f32.vlgmr.msra.gmra.mxu0 %v1911_v48  ;;  %1644 = vmatprep.subr.mxu0 %v2337_v25 }
 0x39e   : >> { %1645 = vmatpush1.msra.mxu0 %v2345_v29  ;;  %v1920_v29 = vld [vmem:[%s2105_s6 + $0x18] sm:$0xff] }
 0x39f   : >> { %1646 = vmatprep.subr.mxu0 %v2351_v39  ;;  %v1919_v39 = vld [vmem:[%s2172_s10 + $0x50] sm:$0xff] }
 0x3a0   : >> { %1647 = vmatpush1.msra.mxu0 %v2357_v45  ;;  %1923 = vmatprep.mubr.msk.f32.mxu1 %vm1289_vm13, %v1919_v39 }
 0x3a1   : >> { %1648 = vmatprep.subr.mxu0 %v2365_v56 }
 0x3a2   : >> { %1649 = vmatpush1.msra.mxu0 %v2370_v14 }
 0x3a3   : >> { %1650 = vmatprep.subr.mxu0 %v2236_v37  ;;  %v1554_v37 = vld [vmem:[#allocation2 + $0x120] sm:$0xff] }
 0x3a4   : >> { %1651 = vmatpush1.msra.mxu0 %v2239_v40  ;;  %v1553_v40 = vld [vmem:[#allocation2 + $0x70] sm:$0xff] }
 0x3a5   : >> { %1652 = vmatprep.subr.mxu0 %v2242_v42  ;;  %v1552_v42 = vld [vmem:[#allocation2 + $0xf0] sm:$0xff] }
 0x3a6   : >> { %1653 = vmatpush1.msra.mxu0 %v2244_v43  ;;  %v1551_v43 = vld [vmem:[#allocation2 + $0xe8] sm:$0xff] }
 0x3a7   : >> { %1654 = vmatprep.subr.mxu0 %v2249_v46  ;;  %v1550_v46 = vld [vmem:[#allocation2 + $0x28] sm:$0xff] }
 0x3a8   : >> { %1655 = vmatpush1.msra.mxu0 %v2252_v47  ;;  %v1549_v47 = vld [vmem:[#allocation2 + $0x40] sm:$0xff] }
 0x3a9   : >> { %1656 = vmatprep.subr.mxu0 %v2255_v50  ;;  %v1548_v50 = vld [vmem:[#allocation2 + $0x8] sm:$0xff] }
 0x3aa   : >> { %1657 = vmatpush1.msra.mxu0 %v2259_v52  ;;  %v1547_v52 = vld [vmem:[#allocation2 + $0xc8] sm:$0xff] }
 0x3ab   : >> { %1658 = vmatprep.subr.mxu0 %v2264_v55  ;;  %v961_v55 = vpop.permute.xlu1 %960 }
 0x3ac   : >> { %1659 = vmatpush1.msra.mxu0 %v2267_v58 }
 0x3ad   : >> { %1660 = vmatprep.subr.mxu0 %v2270_v59 }
 0x3ae   : >> { %1661 = vmatpush1.msra.mxu0 %v2273_v60 }
 0x3af   : >> { %1662 = vmatprep.subr.mxu0 %v2276_v61 }
 0x3b0   : >> { %1663 = vmatpush1.msra.mxu0 %v2279_v63 }
 0x3b1   : >> { %1664 = vmatprep.subr.mxu0 %v2282_v0 }
 0x3b2   : >> { %1665 = vmatpush1.msra.mxu0 %v2285_v1 }
 0x3b3   : >> { %1666 = vmatprep.subr.mxu0 %v2288_v2 }
 0x3b4   : >> { %1667 = vmatpush1.msra.mxu0 %v2291_v3 }
 0x3b5   : >> { %1668 = vmatprep.subr.mxu0 %v1554_v37 }
 0x3b6   : >> { %1669 = vmatpush1.msra.mxu0 %v1553_v40 }
 0x3b7   : >> { %1670 = vmatprep.subr.mxu0 %v1552_v42 }
 0x3b8   : >> { %1671 = vmatpush1.msra.mxu0 %v1551_v43 }
 0x3b9   : >> { %1672 = vmatprep.subr.mxu0 %v1550_v46 }
 0x3ba   : >> { %1673 = vmatpush1.msra.mxu0 %v1549_v47 }
 0x3bb   : >> { %1674 = vmatprep.subr.mxu0 %v1548_v50 }
 0x3bc   : >> { %1675 = vmatpush1.msra.mxu0 %v1547_v52 }
 0x45d   : >> { %v1039_v58 = vpop.f32.mrf.mxu0 }
 0x45e   : >> { %v1040_v59 = vadd.f32 %v1039_v58, %v961_v55 }
 0x45f   : >> { %v1041_v60 = vpop.f32.mrf.mxu0 }
 0x460   : >> { %vm1044_vm14 = vcmp.ge.f32.partialorder %v1040_v59, 0.0  ;;  %v1046_v61 = vmul.f32 0.2, %v1040_v59  ;;  %v1042_v63 = vadd.f32 %v1041_v60, %v961_v55 }
 0x462   : >> { %v1048_v0 = vsel %vm1044_vm14, %v1040_v59, %v1046_v61  ;;  %vm1045_vm15 = vcmp.ge.f32.partialorder %v1042_v63, 0.0  ;;  %v1047_v1 = vmul.f32 0.2, %v1042_v63 }
 0x463   : >> { %v1128_v2 = vrot.slane %v1048_v0, 4  ;;  %1176 = vrot.lane.b32.xlu0 %v1048_v0, %s1999_s24  ;;  %1192 = vrot.lane.b32.xlu1 %v1048_v0, %s1997_s22 }
 0x464   : >> { %v1049_v3 = vsel %vm1045_vm15, %v1042_v63, %v1047_v1 }
 0x465   : >> { %1132 = vst [vmem:[#allocation2 + $0x260] ss:$-92 sps:$4 sm:$0xff] %v1128_v2   ;;  %v1129_v25 = vrot.slane %v1049_v3, 4 }
 0x467   : >> { %1133 = vst [vmem:[#allocation2 + $0x268] ss:$-220 sps:$4 sm:$0xff] %v1129_v25   ;;  %1108 = vrot.lane.b32.xlu0 %v1048_v0, %s2001_s26  ;;  %1156 = vrot.lane.b32.xlu1 %v1048_v0, %s2000_s25 }
 0x46b   : >> { %1194 = vrot.lane.b32.xlu0 %v1049_v3, %s1997_s22  ;;  %1136 = vrot.lane.b32.xlu1 %v1048_v0, %s1998_s23 }
 0x46f   : >> { %1178 = vrot.lane.b32.xlu0 %v1049_v3, %s1999_s24  ;;  %1158 = vrot.lane.b32.xlu1 %v1049_v3, %s2000_s25 }
 0x473   : >> { %1138 = vrot.lane.b32.xlu0 %v1049_v3, %s1998_s23  ;;  %1110 = vrot.lane.b32.xlu1 %v1049_v3, %s2001_s26 }
 0x477   : >> { %1088 = vrot.lane.b32.xlu0 %v1048_v0, %s2002_s27  ;;  %1090 = vrot.lane.b32.xlu1 %v1049_v3, %s2002_s27 }
 0x47b   : >> { %1072 = vrot.lane.b32.xlu0 %v1048_v0, %s2003_s28  ;;  %1074 = vrot.lane.b32.xlu1 %v1049_v3, %s2003_s28 }
 0x47f   : >> { %1052 = vrot.lane.b32.xlu0 %v1048_v0, %s2004_s29  ;;  %1054 = vrot.lane.b32.xlu1 %v1049_v3, %s2004_s29 }
 0x483   : >> { %1286 = vperm.xlu0 %1971, %v1920_v29  }
 0x4d5   : >> { %v1177_v45 = vpop.permute.xlu0 %1176  ;;  %v1193_v53 = vpop.permute.xlu1 %1192 }
 0x4d9   : >> { %v1109_v56 = vpop.permute.xlu0 %1108  ;;  %v1157_v4 = vpop.permute.xlu1 %1156 }
 0x4da   : >> { %v1115_v11 = vsel %vm265_vm9, 0.0, %v1109_v56 }
 0x4db   : >> { %v1116_v13 = vsel %vm2043_vm0, %v1115_v11, 0.0 }
 0x4dc   : >> { %v1120_v14 = vrot.slane %v1116_v13, 4 }
 0x4dd   : >> { %v1195_v15 = vpop.permute.xlu0 %1194  ;;  %v1137_v20 = vpop.permute.xlu1 %1136 }
 0x4de   : >> { %1124 = vst [vmem:[#allocation2 + $0x200] ss:$-140 sps:$4 sm:$0xff] %v1120_v14   ;;  %v1196_v21 = vsel %vm334_vm4, %v1193_v53, %v1195_v15  ;;  %v1199_v22 = vsel %vm334_vm4, %v1195_v15, 0.0 }
 0x4df   : >> { %v1200_v23 = vsel %vm2047_vm1, %v1196_v21, 0.0  ;;  %v1201_v24 = vsel %vm2057_vm3, %v1199_v22, 0.0 }
 0x4e0   : >> { %v1204_v26 = vrot.slane %v1200_v23, 4  ;;  %v1205_v27 = vrot.slane %v1201_v24, 4 }
 0x4e1   : >> { %v1179_v28 = vpop.permute.xlu0 %1178  ;;  %v1159_v30 = vpop.permute.xlu1 %1158 }
 0x4e2   : >> { %1208 = vst [vmem:[#allocation2 + $0x80] ss:$516 sps:$4 sm:$0xff] %v1204_v26   ;;  %1209 = vst [vmem:[#allocation2 + $0x138] ss:$228 sps:$4 sm:$0xff] %v1205_v27   ;;  %v1180_v31 = vsel %vm319_vm6, %v1177_v45, %v1179_v28  ;;  %v1182_v32 = vsel %vm319_vm6, %v1179_v28, 0.0  ;;  %v1160_v33 = vsel %vm306_vm7, %v1157_v4, %v1159_v30  ;;  %v1163_v34 = vsel %vm306_vm7, %v1159_v30, 0.0 }
 0x4e3   : >> { %v1184_v49 = vrot.slane %v1180_v31, 4  ;;  %v1185_v54 = vrot.slane %v1182_v32, 4  ;;  %v1164_v48 = vsel %vm2043_vm0, %v1160_v33, 0.0  ;;  %v1165_v37 = vsel %vm2053_vm2, %v1163_v34, 0.0 }
 0x4e4   : >> { %v1168_v40 = vrot.slane %v1164_v48, 4  ;;  %v1169_v42 = vrot.slane %v1165_v37, 4 }
 0x4e5   : >> { %1188 = vst [vmem:[#allocation2 + $0x280] ss:$-356 sps:$4 sm:$0xff] %v1184_v49   ;;  %1189 = vst [vmem:[#allocation2 + $0x218] ss:$-364 sps:$4 sm:$0xff] %v1185_v54   ;;  %v1139_v43 = vpop.permute.xlu0 %1138  ;;  %v1111_v46 = vpop.permute.xlu1 %1110 }
 0x4e6   : >> { %1172 = vst [vmem:[#allocation2 + $0x118] ss:$-12 sps:$4 sm:$0xff] %v1168_v40   ;;  %1173 = vst [vmem:[#allocation2 + $0xa8] ss:$284 sps:$4 sm:$0xff] %v1169_v42   ;;  %v1140_v47 = vsel %vm287_vm5, %v1137_v20, %v1139_v43  ;;  %v1143_v50 = vsel %vm287_vm5, %v1139_v43, 0.0  ;;  %v1112_v52 = vsel %vm265_vm9, %v1109_v56, %v1111_v46  ;;  %v2587_v42 = vld [vmem:[#allocation2 + $0x200] sm:$0xff] }
 0x4e7   : >> { %v1144_v55 = vsel %vm2047_vm1, %v1140_v47, 0.0  ;;  %v1145_v58 = vsel %vm2057_vm3, %v1143_v50, 0.0  ;;  %v1117_v59 = vsel %vm2053_vm2, %v1112_v52, 0.0 }
 0x4e8   : >> { %v1148_v60 = vrot.slane %v1144_v55, 4  ;;  %v1149_v61 = vrot.slane %v1145_v58, 4  ;;  %v1121_v63 = vrot.slane %v1117_v59, 4 }
 0x4e9   : >> { %v1089_v0 = vpop.permute.xlu0 %1088  ;;  %v1091_v1 = vpop.permute.xlu1 %1090  ;;  %v1283_v2 = vld [vmem:[#allocation2 + $0x138] sm:$0xf]  ;;  %v1282_v3 = vld [vmem:[#allocation2 + $0x80] sm:$0xf] }
 0x4ea   : >> { %1152 = vst [vmem:[#allocation2 + $0x108] ss:$348 sps:$4 sm:$0xff] %v1148_v60   ;;  %1153 = vst [vmem:[#allocation2 + $0x1c0] ss:$172 sps:$4 sm:$0xff] %v1149_v61   ;;  %v1095_v25 = vsel %vm248_vm10, 0.0, %v1089_v0  ;;  %v1092_v29 = vsel %vm248_vm10, %v1089_v0, %v1091_v1  ;;  %1921 = vmatprep.subr.msk.mxu1 %vm369_vm8, %v1283_v2  ;;  %v1918_v60 = vld [vmem:[%s2172_s10 + $0x48] sm:$0xff] }
 0x4eb   : >> { %1125 = vst [vmem:[#allocation2 + $0x188] ss:$-316 sps:$4 sm:$0xff] %v1121_v63   ;;  %v1096_v39 = vsel %vm2047_vm1, %v1095_v25, 0.0  ;;  %v1097_v45 = vsel %vm2057_vm3, %v1092_v29, 0.0  ;;  %1922 = vmatpush2.msk.msra.mxu1 %vm369_vm8, %v1282_v3 }
 0x4ec   : >> { %v1100_v53 = vrot.slane %v1096_v39, 4  ;;  %v1101_v56 = vrot.slane %v1097_v45, 4  ;;  %v2552_v4 = vld [vmem:[#allocation2 + $0x218] sm:$0xff]  ;;  %v2554_v11 = vld [vmem:[#allocation2 + $0x280] sm:$0xff] }
 0x4ed   : >> { %v1073_v13 = vpop.permute.xlu0 %1072  ;;  %1333 = vmatprep.subr.mxu1 %v2552_v4  ;;  %v1075_v14 = vpop.permute.xlu1 %1074  ;;  %v2557_v15 = vld [vmem:[#allocation2 + $0xa8] sm:$0xff]  ;;  %v2563_v24 = vld [vmem:[#allocation2 + $0x118] sm:$0xff] }
 0x4ee   : >> { %1104 = vst [vmem:[#allocation2 + $0x170] ss:$-116 sps:$4 sm:$0xff] %v1100_v53   ;;  %1105 = vst [vmem:[#allocation2 + $0x48] ss:$28 sps:$4 sm:$0xff] %v1101_v56   ;;  %v1078_v20 = vsel %vm233_vm11, 0.0, %v1073_v13  ;;  %v1076_v21 = vsel %vm233_vm11, %v1073_v13, %v1075_v14  ;;  %1334 = vmatpush2.msra.mxu1 %v2554_v11  ;;  %v1926_v56 = vld [vmem:[%s2172_s10 + $0x68] sm:$0xff] }
 0x4ef   : >> { %v1080_v22 = vrot.slane %v1078_v20, 4  ;;  %v1081_v23 = vrot.slane %v1076_v21, 4  ;;  %1335 = vmatprep.subr.mxu1 %v2557_v15  ;;  %1708 = vmatprep.mubr.f32.mxu0 %v1926_v56 }
 0x4f0   : >> { %1336 = vmatpush2.msra.mxu1 %v2563_v24 }
 0x4f1   : >> { %1084 = vst [vmem:[#allocation2 + $0xf8] ss:$52 sps:$4 sm:$0xff] %v1080_v22   ;;  %1085 = vst [vmem:[#allocation2 + $0x60] ss:$372 sps:$4 sm:$0xff] %v1081_v23   ;;  %v1053_v26 = vpop.permute.xlu0 %1052  ;;  %v1055_v27 = vpop.permute.xlu1 %1054  ;;  %v2566_v28 = vld [vmem:[#allocation2 + $0x1c0] sm:$0xff]  ;;  %v2568_v30 = vld [vmem:[#allocation2 + $0x108] sm:$0xff] }
 0x4f2   : >> { %v1059_v31 = vsel %vm216_vm12, 0.0, %v1053_v26  ;;  %v1056_v32 = vsel %vm216_vm12, %v1053_v26, %v1055_v27  ;;  %1337 = vmatprep.subr.mxu1 %v2566_v28  ;;  %v2578_v49 = vld [vmem:[#allocation2 + $0x268] sm:$0xff]  ;;  %v2581_v37 = vld [vmem:[#allocation2 + $0x260] sm:$0xff] }
 0x4f3   : >> { %v1060_v33 = vsel %vm2043_vm0, %v1059_v31, 0.0  ;;  %v1061_v34 = vsel %vm2053_vm2, %v1056_v32, 0.0  ;;  %1338 = vmatpush2.msra.mxu1 %v2568_v30  ;;  %v2584_v40 = vld [vmem:[#allocation2 + $0x188] sm:$0xff] }
 0x4f4   : >> { %v1064_v54 = vrot.slane %v1060_v33, 4  ;;  %v1065_v48 = vrot.slane %v1061_v34, 4  ;;  %1339 = vmatprep.subr.mxu1 %v2578_v49 }
 0x4f5   : >> { %1340 = vmatpush2.msra.mxu1 %v2581_v37  ;;  %v2590_v43 = vld [vmem:[#allocation2 + $0x48] sm:$0xff]  ;;  %v2593_v46 = vld [vmem:[#allocation2 + $0x170] sm:$0xff] }
 0x4f6   : >> { %1068 = vst [vmem:[#allocation2 + $0x128] ss:$340 sps:$4 sm:$0xff] %v1064_v54   ;;  %1069 = vst [vmem:[#allocation2 + $0x1d0] ss:$36 sps:$4 sm:$0xff] %v1065_v48   ;;  %1341 = vmatprep.subr.mxu1 %v2584_v40 }
 0x4f7   : >> { %1342 = vmatpush2.msra.mxu1 %v2587_v42 }
 0x4f8   : >> { %1343 = vmatprep.subr.mxu1 %v2590_v43  ;;  %v2595_v47 = vld [vmem:[#allocation2 + $0x60] sm:$0xff]  ;;  %v2599_v50 = vld [vmem:[#allocation2 + $0xf8] sm:$0xff] }
 0x4f9   : >> { %1344 = vmatpush2.msra.mxu1 %v2593_v46 }
 0x4fa   : >> { %1345 = vmatprep.subr.mxu1 %v2595_v47 }
 0x4fb   : >> { %1346 = vmatpush2.msra.mxu1 %v2599_v50 }
 0x4fd   : >> { %v2602_v52 = vld [vmem:[#allocation2 + $0x1d0] sm:$0xff]  ;;  %v2604_v55 = vld [vmem:[#allocation2 + $0x128] sm:$0xff]  ;;  %v2611_v59 = vld [vmem:[#allocation2 + $0x278] sm:$0xff] }
 0x4fe   : >> { %1347 = vmatprep.subr.mxu1 %v2602_v52  ;;  %v2608_v58 = vld [vmem:[#allocation2 + $0x1f0] sm:$0xff]  ;;  %v1287_v61 = vpop.permute.xlu0 %1286 }
 0x4ff   : >> { %1348 = vmatpush2.msra.mxu1 %v2604_v55 }
 0x500   : >> { %1349 = vmatprep.subr.mxu1 %v2608_v58 }
 0x501   : >> { %1350 = vmatpush2.msra.mxu1 %v2611_v59 }
 0x502   : >> { %1351 = vmatprep.subr.mxu1 %v2439_v57 }
 0x503   : >> { %1352 = vmatpush2.msra.mxu1 %v2442_v62 }
 0x504   : >> { %1353 = vmatprep.subr.mxu1 %v2445_v16 }
 0x505   : >> { %1354 = vmatpush2.msra.mxu1 %v2448_v17 }
 0x506   : >> { %1355 = vmatprep.subr.mxu1 %v2451_v18 }
 0x507   : >> { %1356 = vmatpush2.msra.mxu1 %v2454_v19 }
 0x508   : >> { %1357 = vmatprep.subr.mxu1 %v2457_v35 }
 0x509   : >> { %1358 = vmatpush2.msra.mxu1 %v2460_v36 }
 0x50a   : >> { %1359 = vmatprep.subr.mxu1 %v2463_v38 }
 0x50b   : >> { %1360 = vmatpush2.msra.mxu1 %v2466_v41 }
 0x50c   : >> { %1361 = vmatprep.subr.mxu1 %v2469_v44 }
 0x50d   : >> { %1362 = vmatpush2.msra.mxu1 %v2473_v51 }
 0x50e   : >> { %1364 = vmatmul.mubr.f32.vlgmr.msra.gmra.mxu1 %v1918_v60 }
 0x50f   : >> { %1779 = vmatprep.mubr.f32.mxu1 %v2005_v12  ;;  %v1928_v12 = vld [vmem:[%s2105_s6 + $0x20] sm:$0xff] }
 0x5ce   : >> { %v1365_v63 = vpop.f32.mrf.mxu1 }
 0x5cf   : >> { %v1366_v0 = vadd.f32 %v1365_v63, %v1287_v61 }
 0x5d0   : >> { %v1367_v1 = vpop.f32.mrf.mxu1 }
 0x5d1   : >> { %vm1370_vm14 = vcmp.ge.f32.partialorder %v1366_v0, 0.0  ;;  %v1372_v2 = vmul.f32 0.2, %v1366_v0  ;;  %v1368_v3 = vadd.f32 %v1367_v1, %v1287_v61 }
 0x5d3   : >> { %v1374_v25 = vsel %vm1370_vm14, %v1366_v0, %v1372_v2  ;;  %vm1371_vm15 = vcmp.ge.f32.partialorder %v1368_v3, 0.0  ;;  %v1373_v29 = vmul.f32 0.2, %v1368_v3 }
 0x5d4   : >> { %v1454_v39 = vrot.slane %v1374_v25, 4  ;;  %1378 = vrot.lane.b32.xlu1 %v1374_v25, %s2004_s29 }
 0x5d5   : >> { %v1375_v45 = vsel %vm1371_vm15, %v1368_v3, %v1373_v29 }
 0x5d6   : >> { %1458 = vst [vmem:[#allocation2 + $0x90] ss:$44 sps:$4 sm:$0xff] %v1454_v39   ;;  %v1455_v53 = vrot.slane %v1375_v45, 4  ;;  %1380 = vrot.lane.b32.xlu0 %v1375_v45, %s2004_s29 }
 0x5d8   : >> { %1459 = vst [vmem:[#allocation2 + $0x238] ss:$-108 sps:$4 sm:$0xff] %v1455_v53   ;;  %1502 = vrot.lane.b32.xlu1 %v1374_v25, %s1999_s24 }
 0x5da   : >> { %1518 = vrot.lane.b32.xlu0 %v1374_v25, %s1997_s22 }
 0x5dc   : >> { %1520 = vrot.lane.b32.xlu1 %v1375_v45, %s1997_s22 }
 0x5de   : >> { %1482 = vrot.lane.b32.xlu0 %v1374_v25, %s2000_s25 }
 0x5e0   : >> { %1504 = vrot.lane.b32.xlu1 %v1375_v45, %s1999_s24 }
 0x5e2   : >> { %1462 = vrot.lane.b32.xlu0 %v1374_v25, %s1998_s23 }
 0x5e4   : >> { %1464 = vrot.lane.b32.xlu1 %v1375_v45, %s1998_s23 }
 0x5e6   : >> { %1484 = vrot.lane.b32.xlu0 %v1375_v45, %s2000_s25 }
 0x5e8   : >> { %1434 = vrot.lane.b32.xlu1 %v1374_v25, %s2001_s26 }
 0x5ea   : >> { %1436 = vrot.lane.b32.xlu0 %v1375_v45, %s2001_s26 }
 0x5ec   : >> { %1414 = vrot.lane.b32.xlu1 %v1374_v25, %s2002_s27 }
 0x5ee   : >> { %1416 = vrot.lane.b32.xlu0 %v1375_v45, %s2002_s27 }
 0x5f0   : >> { %1398 = vrot.lane.b32.xlu1 %v1374_v25, %s2003_s28 }
 0x5f2   : >> { %1400 = vrot.lane.b32.xlu0 %v1375_v45, %s2003_s28 }
 0x5f4   : >> { %1631 = vperm.xlu1 %1972, %v1928_v12  }
 0x646   : >> { %v1379_v13 = vpop.permute.xlu1 %1378 }
 0x647   : >> { %v1385_v14 = vsel %vm216_vm12, 0.0, %v1379_v13 }
 0x648   : >> { %v1386_v20 = vsel %vm2043_vm0, %v1385_v14, 0.0  ;;  %v1381_v21 = vpop.permute.xlu0 %1380 }
 0x649   : >> { %v1390_v22 = vrot.slane %v1386_v20, 4  ;;  %v1382_v23 = vsel %vm216_vm12, %v1379_v13, %v1381_v21 }
 0x64a   : >> { %v1387_v26 = vsel %vm2053_vm2, %v1382_v23, 0.0  ;;  %v1503_v27 = vpop.permute.xlu1 %1502 }
 0x64b   : >> { %1394 = vst [vmem:[#allocation2 + $0x1f8] ss:$-372 sps:$4 sm:$0xff] %v1390_v22   ;;  %v1391_v31 = vrot.slane %v1387_v26, 4 }
 0x64c   : >> { %v1519_v32 = vpop.permute.xlu0 %1518 }
 0x64d   : >> { %1395 = vst [vmem:[#allocation2 + $0xb0] ss:$140 sps:$4 sm:$0xff] %v1391_v31  }
 0x64e   : >> { %v1521_v33 = vpop.permute.xlu1 %1520 }
 0x64f   : >> { %v1522_v34 = vsel %vm334_vm4, %v1519_v32, %v1521_v33  ;;  %v1525_v54 = vsel %vm334_vm4, %v1521_v33, 0.0  ;;  %vm1634_vm4 = vcmask 556032  }
 0x650   : >> { %v1526_v48 = vsel %vm2047_vm1, %v1522_v34, 0.0  ;;  %v1527_v60 = vsel %vm2057_vm3, %v1525_v54, 0.0  ;;  %v1483_v61 = vpop.permute.xlu0 %1482 }
 0x651   : >> { %v1530_v63 = vrot.slane %v1526_v48, 4  ;;  %v1531_v0 = vrot.slane %v1527_v60, 4 }
 0x652   : >> { %v1505_v1 = vpop.permute.xlu1 %1504  ;;  %v1609_v53 = vld [vmem:[#allocation2 + $0x80] sm:$0xff] }
 0x653   : >> { %1534 = vst [vmem:[#allocation2 + $0x178] ss:$-316 sps:$4 sm:$0xff] %v1530_v63   ;;  %1535 = vst [vmem:[#allocation2 + $0x18] ss:$508 sps:$4 sm:$0xff] %v1531_v0   ;;  %v1506_v2 = vsel %vm319_vm6, %v1503_v27, %v1505_v1  ;;  %v1508_v3 = vsel %vm319_vm6, %v1505_v1, 0.0 }
 0x654   : >> { %v1510_v25 = vrot.slane %v1506_v2, 4  ;;  %v1511_v29 = vrot.slane %v1508_v3, 4  ;;  %v1463_v39 = vpop.permute.xlu0 %1462  ;;  %v1610_v45 = vld [vmem:[#allocation2 + $0x138] sm:$0xff] }
 0x655   : >> { %1676 = vmatprep.subr.mxu0 %v1610_v45 }
 0x656   : >> { %1514 = vst [vmem:[#allocation2 + $0x38] ss:$332 sps:$4 sm:$0xff] %v1510_v25   ;;  %1515 = vst [vmem:[#allocation2 + $0x210] ss:$60 sps:$4 sm:$0xff] %v1511_v29   ;;  %1677 = vmatpush2.msra.mxu0 %v1609_v53  ;;  %v1465_v12 = vpop.permute.xlu1 %1464 }
 0x657   : >> { %v1466_v56 = vsel %vm287_vm5, %v1463_v39, %v1465_v12  ;;  %v1469_v13 = vsel %vm287_vm5, %v1465_v12, 0.0  ;;  %1678 = vmatprep.subr.mxu0 %v2552_v4 }
 0x658   : >> { %v1470_v14 = vsel %vm2047_vm1, %v1466_v56, 0.0  ;;  %v1471_v20 = vsel %vm2057_vm3, %v1469_v13, 0.0  ;;  %v1485_v21 = vpop.permute.xlu0 %1484  ;;  %1679 = vmatpush2.msra.mxu0 %v2554_v11 }
 0x659   : >> { %v1474_v22 = vrot.slane %v1470_v14, 4  ;;  %v1475_v23 = vrot.slane %v1471_v20, 4  ;;  %v1486_v26 = vsel %vm306_vm7, %v1483_v61, %v1485_v21  ;;  %v1489_v27 = vsel %vm306_vm7, %v1485_v21, 0.0  ;;  %1680 = vmatprep.subr.mxu0 %v2557_v15  ;;  %v1925_v20 = vld [vmem:[%s2172_s10 + $0x60] sm:$0xff] }
 0x65a   : >> { %v1490_v4 = vsel %vm2043_vm0, %v1486_v26, 0.0  ;;  %v1491_v31 = vsel %vm2053_vm2, %v1489_v27, 0.0  ;;  %1681 = vmatpush2.msra.mxu0 %v2563_v24  ;;  %v1435_v32 = vpop.permute.xlu1 %1434  ;;  %v1628_v33 = vld [vmem:[#allocation2 + $0x18] sm:$0xf] }
 0x65b   : >> { %v1627_v34 = vld [vmem:[#allocation2 + $0x178] sm:$0xf]  ;;  %1478 = vst [vmem:[#allocation2 + $0x58] ss:$60 sps:$4 sm:$0xff] %v1474_v22   ;;  %1479 = vst [vmem:[#allocation2 + $0x158] ss:$228 sps:$4 sm:$0xff] %v1475_v23   ;;  %1682 = vmatprep.subr.mxu0 %v2566_v28  ;;  %1929 = vmatprep.subr.msk.mxu1 %vm369_vm8, %v1628_v33 }
 0x65c   : >> { %v1494_v11 = vrot.slane %v1490_v4, 4  ;;  %v1495_v54 = vrot.slane %v1491_v31, 4  ;;  %v1441_v48 = vsel %vm265_vm9, 0.0, %v1435_v32  ;;  %v1437_v60 = vpop.permute.xlu0 %1436  ;;  %1683 = vmatpush2.msra.mxu0 %v2568_v30  ;;  %1930 = vmatpush1.msk.msra.mxu1 %vm369_vm8, %v1627_v34 }
 0x65d   : >> { %v1442_v15 = vsel %vm2043_vm0, %v1441_v48, 0.0  ;;  %v1438_v61 = vsel %vm265_vm9, %v1435_v32, %v1437_v60  ;;  %1684 = vmatprep.subr.mxu0 %v2578_v49  ;;  %v1626_v63 = vld [vmem:[#allocation2 + $0x210] sm:$0xff]  ;;  %v1625_v0 = vld [vmem:[#allocation2 + $0x38] sm:$0xff] }
 0x65e   : >> { %1498 = vst [vmem:[#allocation2 + $0x180] ss:$-292 sps:$4 sm:$0xff] %v1494_v11   ;;  %1499 = vst [vmem:[#allocation2 + $0x248] ss:$-236 sps:$4 sm:$0xff] %v1495_v54   ;;  %v1446_v24 = vrot.slane %v1442_v15, 4  ;;  %v1443_v28 = vsel %vm2053_vm2, %v1438_v61, 0.0  ;;  %1685 = vmatpush2.msra.mxu0 %v2581_v37  ;;  %1731 = vmatprep.subr.mxu1 %v1626_v63  ;;  %v1415_v1 = vpop.permute.xlu1 %1414 }
 0x65f   : >> { %v1447_v30 = vrot.slane %v1443_v28, 4  ;;  %v1421_v2 = vsel %vm248_vm10, 0.0, %v1415_v1  ;;  %1686 = vmatprep.subr.mxu0 %v2584_v40  ;;  %1732 = vmatpush1.msra.mxu1 %v1625_v0 }
 0x660   : >> { %1450 = vst [vmem:[#allocation2 + $0xb8] ss:$-164 sps:$4 sm:$0xff] %v1446_v24   ;;  %v1422_v3 = vsel %vm2047_vm1, %v1421_v2, 0.0  ;;  %v1417_v49 = vpop.permute.xlu0 %1416  ;;  %1687 = vmatpush2.msra.mxu0 %v2587_v42 }
 0x661   : >> { %1451 = vst [vmem:[#allocation2 + $0x1c8] ss:$-148 sps:$4 sm:$0xff] %v1447_v30   ;;  %v1426_v25 = vrot.slane %v1422_v3, 4  ;;  %v1418_v29 = vsel %vm248_vm10, %v1415_v1, %v1417_v49  ;;  %1688 = vmatprep.subr.mxu0 %v2590_v43 }
 0x662   : >> { %v1423_v37 = vsel %vm2057_vm3, %v1418_v29, 0.0  ;;  %1689 = vmatpush2.msra.mxu0 %v2593_v46  ;;  %v1399_v39 = vpop.permute.xlu1 %1398 }
 0x663   : >> { %1430 = vst [vmem:[#allocation2 + $0x10] ss:$92 sps:$4 sm:$0xff] %v1426_v25   ;;  %v1427_v40 = vrot.slane %v1423_v37, 4  ;;  %v1404_v45 = vsel %vm233_vm11, 0.0, %v1399_v39  ;;  %1690 = vmatprep.subr.mxu0 %v2595_v47 }
 0x664   : >> { %v1406_v53 = vrot.slane %v1404_v45, 4  ;;  %v1401_v42 = vpop.permute.xlu0 %1400  ;;  %1691 = vmatpush2.msra.mxu0 %v2599_v50  ;;  %v1620_v50 = vld [vmem:[#allocation2 + $0x238] sm:$0xff] }
 0x665   : >> { %v1624_v12 = vld [vmem:[#allocation2 + $0x248] sm:$0xff]  ;;  %v1623_v56 = vld [vmem:[#allocation2 + $0x180] sm:$0xff]  ;;  %1431 = vst [vmem:[#allocation2 + $0x130] ss:$20 sps:$4 sm:$0xff] %v1427_v40   ;;  %v1402_v43 = vsel %vm233_vm11, %v1399_v39, %v1401_v42  ;;  %1692 = vmatprep.subr.mxu0 %v2602_v52  ;;  %v1622_v13 = vld [vmem:[#allocation2 + $0x158] sm:$0xff] }
 0x666   : >> { %1733 = vmatprep.subr.mxu1 %v1624_v12  ;;  %1410 = vst [vmem:[#allocation2 + $0x68] ss:$404 sps:$4 sm:$0xff] %v1406_v53   ;;  %v1407_v46 = vrot.slane %v1402_v43, 4  ;;  %1693 = vmatpush2.msra.mxu0 %v2604_v55  ;;  %v1621_v47 = vld [vmem:[#allocation2 + $0x58] sm:$0xff]  ;;  %v1619_v52 = vld [vmem:[#allocation2 + $0x90] sm:$0xff] }
 0x667   : >> { %1734 = vmatpush1.msra.mxu1 %v1623_v56  ;;  %1694 = vmatprep.subr.mxu0 %v2608_v58  ;;  %v1617_v55 = vld [vmem:[#allocation2 + $0xb8] sm:$0xff] }
 0x668   : >> { %1735 = vmatprep.subr.mxu1 %v1622_v13  ;;  %1411 = vst [vmem:[#allocation2 + $0x140] ss:$-140 sps:$4 sm:$0xff] %v1407_v46   ;;  %1695 = vmatpush2.msra.mxu0 %v2611_v59  ;;  %v1618_v14 = vld [vmem:[#allocation2 + $0x1c8] sm:$0xff] }
 0x669   : >> { %1736 = vmatpush1.msra.mxu1 %v1621_v47  ;;  %1696 = vmatprep.subr.mxu0 %v2439_v57 }
 0x66a   : >> { %1737 = vmatprep.subr.mxu1 %v1620_v50  ;;  %1697 = vmatpush2.msra.mxu0 %v2442_v62  ;;  %v1615_v59 = vld [vmem:[#allocation2 + $0x10] sm:$0xff] }
 0x66b   : >> { %1738 = vmatpush1.msra.mxu1 %v1619_v52  ;;  %1698 = vmatprep.subr.mxu0 %v2445_v16 }
 0x66c   : >> { %1739 = vmatprep.subr.mxu1 %v1618_v14  ;;  %1699 = vmatpush2.msra.mxu0 %v2448_v17  ;;  %v1616_v58 = vld [vmem:[#allocation2 + $0x130] sm:$0xff] }
 0x66d   : >> { %1740 = vmatpush1.msra.mxu1 %v1617_v55  ;;  %1700 = vmatprep.subr.mxu0 %v2451_v18  ;;  %v1613_v62 = vld [vmem:[#allocation2 + $0x68] sm:$0xff]  ;;  %v1927_v17 = vld [vmem:[%s2172_s10 + $0x70] sm:$0xff]  ;;  %v1611_v18 = vld [vmem:[#allocation2 + $0x1f8] sm:$0xff] }
 0x66e   : >> { %1741 = vmatprep.subr.mxu1 %v1616_v58  ;;  %1701 = vmatpush2.msra.mxu0 %v2454_v19 }
 0x66f   : >> { %1742 = vmatpush1.msra.mxu1 %v1615_v59  ;;  %1702 = vmatprep.subr.mxu0 %v2457_v35  ;;  %v1614_v57 = vld [vmem:[#allocation2 + $0x140] sm:$0xff]  ;;  %v1612_v16 = vld [vmem:[#allocation2 + $0xb0] sm:$0xff]  ;;  %v1632_v19 = vpop.permute.xlu1 %1631 }
 0x670   : >> { %1703 = vmatpush2.msra.mxu0 %v2460_v36  ;;  %1743 = vmatprep.subr.mxu1 %v1614_v57 }
 0x671   : >> { %1704 = vmatprep.subr.mxu0 %v2463_v38  ;;  %1744 = vmatpush1.msra.mxu1 %v1613_v62 }
 0x672   : >> { %1705 = vmatpush2.msra.mxu0 %v2466_v41  ;;  %1745 = vmatprep.subr.mxu1 %v1612_v16 }
 0x673   : >> { %1706 = vmatprep.subr.mxu0 %v2469_v44  ;;  %1746 = vmatpush1.msra.mxu1 %v1611_v18 }
 0x674   : >> { %1707 = vmatpush2.msra.mxu0 %v2473_v51  ;;  %1931 = vmatmul.mubr.msk.f32.vlgmr.msra.gmra.mxu1 %vm1634_vm4, %v1927_v17 }
 0x675   : >> { %1709 = vmatmul.mubr.f32.vlgmr.msra.gmra.mxu0 %v1925_v20 }
 0x734   : >> { %v1781_v36 = vpop.f32.mrf.mxu1 }
 0x735   : >> { %v1710_v35 = vpop.f32.mrf.mxu0 }
 0x736   : >> { %v1711_v38 = vadd.f32 %v1710_v35, %v1632_v19  ;;  %v1783_v26 = vpop.f32.mrf.mxu1 }
 0x737   : >> { %v1712_v21 = vpop.f32.mrf.mxu0 }
 0x738   : >> { %v1782_v22 = vadd.f32 %v1781_v36, %v1711_v38  ;;  %v1713_v23 = vadd.f32 %v1712_v21, %v1632_v19 }
 0x73a   : >> { %v1784_v27 = vadd.f32 %v1783_v26, %v1713_v23  ;;  %v1786_v41 = vmul.f32 0.2, %v1782_v22 }
 0x73c   : >> { %v1787_v4 = vmul.f32 0.2, %v1784_v27 }
 0x73e   : >> { %v1790_v31 = vcombine.low %v1786_v41, %v1787_v4  ;;  %207 = sbr.rel (!%p205_p4) target bundleno = 20 (0x14), region = 79 }
 0x740   : >> { %v1792_v32 = vadd.f32 %v1991_v10, %v1790_v31  }
 0x742   : >> { %v2744_v10 = vmov %v1792_v32  ;;  %v1793_v44 = vmul.f32 (%p205_p4), 0.2, %v1792_v32 }
 0x744   : > { %v1794_v51 = vadd.f32 %v1793_v44, %v2051_v7 }
 0x746   : > { %1795 = vst [vmem:[%s2041_s20] sm:$0xff] %v1794_v51 }
 0x747 PF: > { %s13_s12 = sadd.s32 1, %s1987_s12  }
 0x748   : > { %p10_p5 = scmp.ge.s32.totalorder %s13_s12, 4  }
 0x74a   :  { %12 = sbr.rel (!%p10_p5) target bundleno = 1 (0x1), region = 90 }

</bundles_post_ra>
